<compile_context>
chip_gen: v6e
topology: v6e:2x2x1
jax: 0.10.0
libtpu: 0.0.40
codegen_flags: <defaults>
</compile_context>

<pallas_src>
import functools
import math

import jax
import jax.numpy as jnp
import numpy as np
from jax.experimental import pallas as pl
from jax.experimental.pallas import tpu as pltpu


def _mha_kernel(x_ref, wqkv_ref, bqkv_ref, wo_ref, bo_ref, o_ref, ctx_ref,
                *, n_heads, head_dim, d_model):
    bn, t, dpad = x_ref.shape
    rows = bn * t
    x2 = x_ref[...].reshape(rows, dpad)                              # bf16

    # Fused QKV projection: one wide bf16 MXU matmul, f32 accumulation.
    # Query scale already folded into the Q columns of wqkv / bqkv.
    qkv = jnp.dot(x2, wqkv_ref[...],
                  preferred_element_type=jnp.float32) + bqkv_ref[...]  # (rows, 3*Dpad) f32
    q = qkv[:, 0 * dpad:1 * dpad].reshape(bn, t, dpad)
    k = qkv[:, 1 * dpad:2 * dpad].reshape(bn, t, dpad)
    v = qkv[:, 2 * dpad:3 * dpad].reshape(bn, t, dpad)

    # Padded lanes of the context scratch must be zero (they feed the Wo
    # matmul against zero rows; stale VMEM garbage could be NaN).
    if dpad > d_model:
        ctx_ref[...] = jnp.zeros_like(ctx_ref)

    # Per-head attention, batched over the bn sequences (einsum folds the
    # K-transpose into the MXU operand feed).  Each head writes its context
    # into a static lane slice of the VMEM scratch -- no lane concatenation.
    for h in range(n_heads):
        sl = slice(h * head_dim, (h + 1) * head_dim)
        qh = q[..., sl].astype(jnp.bfloat16)
        kh = k[..., sl].astype(jnp.bfloat16)
        vh = v[..., sl].astype(jnp.bfloat16)
        s = jnp.einsum('bqd,bkd->bqk', qh, kh,
                       preferred_element_type=jnp.float32)           # (bn, T, T)
        s = s - jnp.max(s, axis=-1, keepdims=True)
        p = jnp.exp(s)
        p = p * pl.reciprocal(jnp.sum(p, axis=-1, keepdims=True), approx=True)
        ctx_h = jnp.einsum('bqk,bkd->bqd', p.astype(jnp.bfloat16), vh,
                           preferred_element_type=jnp.float32)       # (bn, T, hd)
        ctx_ref[:, sl] = ctx_h.reshape(rows, head_dim).astype(jnp.bfloat16)

    # Single K=Dpad output projection from the full-width context scratch.
    out = jnp.dot(ctx_ref[...], wo_ref[...],
                  preferred_element_type=jnp.float32) + bo_ref[...]  # (rows, Dpad)
    o_ref[...] = out.reshape(bn, t, dpad).astype(o_ref.dtype)


def _round_up(v, m):
    return ((v + m - 1) // m) * m


def _vmem_plan():
    """(vmem_limit_bytes, block-budget bytes) derived from the part's VMEM."""
    phys = 64 * 1024 * 1024                      # conservative fallback (v7x)
    try:
        phys = int(pltpu.get_tpu_info().vmem_capacity_bytes)
    except Exception:
        pass
    vmem_limit = min(int(phys * 0.75), 100 * 1024 * 1024)   # 48 MiB v7x / 96 MiB v5e,v6e
    budget = int(vmem_limit * 0.85)
    return vmem_limit, budget


def _choose_block_n(n_seq, t, dpad, budget_bytes, *, min_steps=4):
    """Sequences per grid step.

    Cap by a per-sequence VMEM working-set estimate (blocks + qkv intermediate
    + bf16 copies + ctx scratch + one head's score tensor), aim for >=256 MXU
    rows per step, and keep >=min_steps grid steps (dual-TC parts get >=2
    pipelined steps per core) unless that would underfill the MXU.
    """
    per_seq = t * dpad * 34 + 8 * t * t          # bytes per sequence in a block
    weights = 8 * dpad * dpad + 16 * dpad        # bf16 Wqkv + Wo, f32 biases (single-buffered)
    cap = max(1, (budget_bytes - weights) // per_seq)
    target = max(1, -(-256 // t))                # >=256 MXU rows per step
    steps_cap = max(target, -(-n_seq // min_steps))
    return max(1, min(cap, n_seq, steps_cap))


def _weight_spec(shape):
    """Constant-index weight/bias block: single-buffer it (no re-DMA across
    grid steps), halving its VMEM residency."""
    index_map = lambda n: (0,) * len(shape)
    try:
        return pl.BlockSpec(shape, index_map, pipeline_mode=pl.Buffered(1))
    except Exception:                            # older API without pipeline_mode
        return pl.BlockSpec(shape, index_map)


def temporal_self_attention(x, params, n_heads):
    """x: [B, T, S, D] -> [B, T, S, D] (matches the PyTorch module, eval mode)."""
    B, T, S, D = x.shape
    assert D % n_heads == 0
    head_dim = D // n_heads
    N = B * S

    wqkv, bqkv, wo, bo = params
    dpad = wqkv.shape[0]                         # D padded to a 128-lane multiple

    # [B, T, S, D] -> [B, S, T, D] -> [N, T, D]  (XLA-side relayout), bf16 feed.
    xr = jnp.transpose(x, (0, 2, 1, 3)).reshape(N, T, D).astype(jnp.bfloat16)

    vmem_limit, budget = _vmem_plan()
    bn = _choose_block_n(N, T, dpad, budget)
    n_pad = _round_up(N, bn)

    # Zero-pad the sequence count and the feature lanes (padded sequences
    # compute harmless values and are sliced off below).
    xr = jnp.pad(xr, ((0, n_pad - N), (0, 0), (0, dpad - D)))

    kernel = functools.partial(_mha_kernel, n_heads=n_heads, head_dim=head_dim,
                               d_model=D)

    out = pl.pallas_call(
        kernel,
        out_shape=jax.ShapeDtypeStruct((n_pad, T, dpad), x.dtype),
        grid=(n_pad // bn,),
        in_specs=[
            pl.BlockSpec((bn, T, dpad), lambda n: (n, 0, 0)),   # x sequences (bf16)
            _weight_spec((dpad, 3 * dpad)),                     # fused Wqkv (bf16)
            _weight_spec((1, 3 * dpad)),                        # fused bqkv (f32)
            _weight_spec((dpad, dpad)),                         # Wo^T (bf16)
            _weight_spec((1, dpad)),                            # bo (f32)
        ],
        out_specs=pl.BlockSpec((bn, T, dpad), lambda n: (n, 0, 0)),
        scratch_shapes=[pltpu.VMEM((bn * T, dpad), jnp.bfloat16)],   # head contexts
        compiler_params=pltpu.CompilerParams(
            dimension_semantics=("parallel",),
            vmem_limit_bytes=vmem_limit,
        ),
    )(xr, wqkv, bqkv, wo, bo)

    out = out[:N, :, :D]
    # [N, T, D] -> [B, S, T, D] -> [B, T, S, D]
    return jnp.transpose(out.reshape(B, S, T, D), (0, 2, 1, 3))


def make_torch_params(key, d_model):
    """Deterministic init mirroring nn.MultiheadAttention parameter shapes:
    in_proj_weight [3D, D], in_proj_bias [3D], out_proj.weight [D, D],
    out_proj.bias [D]."""
    k1, k2, k3, k4 = jax.random.split(key, 4)
    std = 0.05
    in_proj_w = jax.random.normal(k1, (3 * d_model, d_model), jnp.float32) * std
    in_proj_b = jax.random.normal(k2, (3 * d_model,), jnp.float32) * std
    out_proj_w = jax.random.normal(k3, (d_model, d_model), jnp.float32) * std
    out_proj_b = jax.random.normal(k4, (d_model,), jnp.float32) * std
    return in_proj_w, in_proj_b, out_proj_w, out_proj_b


def prepare_params(torch_params, n_heads):
    """Pack for the kernel: lane-padded, pre-transposed, bf16 fused Wqkv
    [Dpad, 3*Dpad] with the 1/sqrt(head_dim) query scale folded into the Q
    columns, f32 bqkv [1, 3*Dpad], bf16 Wo^T [Dpad, Dpad], f32 bo [1, Dpad]."""
    in_proj_w, in_proj_b, out_proj_w, out_proj_b = torch_params
    d = out_proj_w.shape[0]
    head_dim = d // n_heads
    scale = 1.0 / math.sqrt(head_dim)
    dpad = _round_up(d, 128)

    wq = jnp.transpose(in_proj_w[0 * d:1 * d]) * scale
    wk = jnp.transpose(in_proj_w[1 * d:2 * d])
    wv = jnp.transpose(in_proj_w[2 * d:3 * d])
    bq = in_proj_b[0 * d:1 * d] * scale
    bk = in_proj_b[1 * d:2 * d]
    bv = in_proj_b[2 * d:3 * d]

    def pad_w(w):
        return jnp.zeros((dpad, dpad), jnp.float32).at[:d, :d].set(w)

    def pad_b(b):
        return jnp.zeros((dpad,), jnp.float32).at[:d].set(b)

    wqkv = jnp.concatenate([pad_w(wq), pad_w(wk), pad_w(wv)], axis=1)   # [Dpad, 3*Dpad]
    bqkv = jnp.concatenate([pad_b(bq), pad_b(bk), pad_b(bv)])[None, :]  # [1, 3*Dpad]
    wo = pad_w(jnp.transpose(out_proj_w))                               # [Dpad, Dpad]
    bo = pad_b(out_proj_b)[None, :]                                     # [1, Dpad]
    return (wqkv.astype(jnp.bfloat16), bqkv, wo.astype(jnp.bfloat16), bo)


def reference(x, torch_params, n_heads):
    """Pure-JAX f32 reference matching torch.nn.MultiheadAttention (eval mode)."""
    B, T, S, D = x.shape
    hd = D // n_heads
    in_proj_w, in_proj_b, out_proj_w, out_proj_b = torch_params
    wq = in_proj_w[0 * D:1 * D].T
    wk = in_proj_w[1 * D:2 * D].T
    wv = in_proj_w[2 * D:3 * D].T
    bq = in_proj_b[0 * D:1 * D]
    bk = in_proj_b[1 * D:2 * D]
    bv = in_proj_b[2 * D:3 * D]

    xr = jnp.transpose(x, (0, 2, 1, 3)).reshape(B * S, T, D)
    q = (xr @ wq + bq).reshape(-1, T, n_heads, hd)
    k = (xr @ wk + bk).reshape(-1, T, n_heads, hd)
    v = (xr @ wv + bv).reshape(-1, T, n_heads, hd)
    s = jnp.einsum('nqhd,nkhd->nhqk', q, k) / math.sqrt(hd)
    p = jax.nn.softmax(s, axis=-1)
    ctx = jnp.einsum('nhqk,nkhd->nqhd', p, v).reshape(-1, T, D)
    out = ctx @ out_proj_w.T + out_proj_b
    return jnp.transpose(out.reshape(B, S, T, D), (0, 2, 1, 3))


if __name__ == "__main__":
    B, T, S, D = 2, 8, 4, 32
    n_heads = 4

    key = jax.random.PRNGKey(0)
    kx, kp = jax.random.split(key)
    x = jax.random.normal(kx, (B, T, S, D), jnp.float32)

    torch_params = make_torch_params(kp, D)
    params = prepare_params(torch_params, n_heads)

    out = jax.block_until_ready(temporal_self_attention(x, params, n_heads))
    ref = reference(x, torch_params, n_heads)

    # bf16 MXU operands + approx reciprocal in the softmax -> relaxed tolerance
    np.testing.assert_allclose(np.asarray(out), np.asarray(ref),
                               rtol=2e-2, atol=2e-2)
    assert out.shape == (B, T, S, D)
    print("KERNEL_OK")
</pallas_src>

<mosaic_0001>
module attributes {stable_mosaic.version = 11 : i64} {
  func.func @_mha_kernel(%arg0: i32, %arg1: memref<8x8x128xbf16, #tpu.memory_space<vmem>>, %arg2: memref<128x384xbf16, #tpu.memory_space<vmem>>, %arg3: memref<1x384xf32, #tpu.memory_space<vmem>>, %arg4: memref<128x128xbf16, #tpu.memory_space<vmem>>, %arg5: memref<1x128xf32, #tpu.memory_space<vmem>>, %arg6: memref<8x8x128xf32, #tpu.memory_space<vmem>>, %arg7: memref<64x128xbf16, #tpu.memory_space<vmem>>) attributes {dimension_semantics = [#tpu.dimension_semantics<parallel>], iteration_bounds = array<i64: 1>, scalar_prefetch = 0 : i64, scratch_operands = 1 : i64, tpu.core_type = #tpu.core_type<tc>, window_params = [{transform_indices = @transform_0, window_bounds = array<i64: 8, 8, 128>}, {pipeline_mode = #tpu.pipeline_mode<synchronous>, transform_indices = @transform_1, window_bounds = array<i64: 128, 384>}, {pipeline_mode = #tpu.pipeline_mode<synchronous>, transform_indices = @transform_2, window_bounds = array<i64: 1, 384>}, {pipeline_mode = #tpu.pipeline_mode<synchronous>, transform_indices = @transform_3, window_bounds = array<i64: 128, 128>}, {pipeline_mode = #tpu.pipeline_mode<synchronous>, transform_indices = @transform_4, window_bounds = array<i64: 1, 128>}, {transform_indices = @transform_5, window_bounds = array<i64: 8, 8, 128>}]} {
    %c0 = arith.constant 0 : index
    %c0_0 = arith.constant 0 : index
    %c0_1 = arith.constant 0 : index
    %0 = vector.load %arg1[%c0, %c0_0, %c0_1] : memref<8x8x128xbf16, #tpu.memory_space<vmem>>, vector<8x8x128xbf16>
    %1 = vector.shape_cast %0 : vector<8x8x128xbf16> to vector<64x128xbf16>
    %c0_2 = arith.constant 0 : index
    %c0_3 = arith.constant 0 : index
    %2 = vector.load %arg2[%c0_2, %c0_3] : memref<128x384xbf16, #tpu.memory_space<vmem>>, vector<128x384xbf16>
    %cst = arith.constant dense<0.000000e+00> : vector<64x384xf32>
    %3 = tpu.matmul %1, %2, %cst {dimension_numbers = #tpu.dot_dimension_numbers<[1], [0], [0], [1], [0, 0, 1, 1], [], []>} : vector<64x128xbf16>, vector<128x384xbf16>, vector<64x384xf32> -> vector<64x384xf32>
    %c0_4 = arith.constant 0 : index
    %c0_5 = arith.constant 0 : index
    %4 = vector.load %arg3[%c0_4, %c0_5] : memref<1x384xf32, #tpu.memory_space<vmem>>, vector<1x384xf32>
    %5 = vector.broadcast %4 : vector<1x384xf32> to vector<64x384xf32>
    %6 = arith.addf %3, %5 : vector<64x384xf32>
    %7 = vector.extract_strided_slice %6 {offsets = [0, 0], sizes = [64, 128], strides = [1, 1]} : vector<64x384xf32> to vector<64x128xf32>
    %8 = vector.shape_cast %7 : vector<64x128xf32> to vector<8x8x128xf32>
    %9 = vector.extract_strided_slice %6 {offsets = [0, 128], sizes = [64, 128], strides = [1, 1]} : vector<64x384xf32> to vector<64x128xf32>
    %10 = vector.shape_cast %9 : vector<64x128xf32> to vector<8x8x128xf32>
    %11 = vector.extract_strided_slice %6 {offsets = [0, 256], sizes = [64, 128], strides = [1, 1]} : vector<64x384xf32> to vector<64x128xf32>
    %12 = vector.shape_cast %11 : vector<64x128xf32> to vector<8x8x128xf32>
    %cst_6 = arith.constant 0.000000e+00 : bf16
    %13 = vector.broadcast %cst_6 : bf16 to vector<64x128xbf16>
    %c0_7 = arith.constant 0 : index
    %c0_8 = arith.constant 0 : index
    %14 = vector.load %arg7[%c0_7, %c0_8] : memref<64x128xbf16, #tpu.memory_space<vmem>>, vector<64x128xbf16>
    tpu.vector_store %arg7[%c0_7, %c0_8], %13 {strides = array<i32>} : memref<64x128xbf16, #tpu.memory_space<vmem>>, vector<64x128xbf16>,
    %15 = vector.extract_strided_slice %8 {offsets = [0, 0, 0], sizes = [8, 8, 8], strides = [1, 1, 1]} : vector<8x8x128xf32> to vector<8x8x8xf32>
    %16 = arith.truncf %15 : vector<8x8x8xf32> to vector<8x8x8xbf16>
    %17 = vector.extract_strided_slice %10 {offsets = [0, 0, 0], sizes = [8, 8, 8], strides = [1, 1, 1]} : vector<8x8x128xf32> to vector<8x8x8xf32>
    %18 = arith.truncf %17 : vector<8x8x8xf32> to vector<8x8x8xbf16>
    %19 = vector.extract_strided_slice %12 {offsets = [0, 0, 0], sizes = [8, 8, 8], strides = [1, 1, 1]} : vector<8x8x128xf32> to vector<8x8x8xf32>
    %20 = arith.truncf %19 : vector<8x8x8xf32> to vector<8x8x8xbf16>
    "tpu.trace_start"() <{level = 10 : i32, message = "bqd,bkd->bqk"}> : () -> ()
    %cst_9 = arith.constant dense<0.000000e+00> : vector<8x8x8xf32>
    %21 = tpu.matmul %16, %18, %cst_9 {dimension_numbers = #tpu.dot_dimension_numbers<[2], [2], [1], [1], [0, 0, 0, 1, 1, 1], [0], [0]>} : vector<8x8x8xbf16>, vector<8x8x8xbf16>, vector<8x8x8xf32> -> vector<8x8x8xf32>
    "tpu.trace_stop"() : () -> ()
    %cst_10 = arith.constant dense<0xFF800000> : vector<8x8xf32>
    %22 = vector.multi_reduction <maximumf>, %21, %cst_10 [2] : vector<8x8x8xf32> to vector<8x8xf32>
    %23 = vector.shape_cast %22 : vector<8x8xf32> to vector<8x8x1xf32>
    %24 = vector.broadcast %23 : vector<8x8x1xf32> to vector<8x8x8xf32>
    %25 = arith.subf %21, %24 : vector<8x8x8xf32>
    %26 = math.exp %25 : vector<8x8x8xf32>
    %cst_11 = arith.constant dense<0.000000e+00> : vector<8x8xf32>
    %27 = vector.multi_reduction <add>, %26, %cst_11 [2] : vector<8x8x8xf32> to vector<8x8xf32>
    %28 = vector.shape_cast %27 : vector<8x8xf32> to vector<8x8x1xf32>
    %29 = tpu.reciprocal %28 {approx = true} : vector<8x8x1xf32> -> vector<8x8x1xf32>
    %30 = vector.broadcast %29 : vector<8x8x1xf32> to vector<8x8x8xf32>
    %31 = arith.mulf %26, %30 : vector<8x8x8xf32>
    %32 = arith.truncf %31 : vector<8x8x8xf32> to vector<8x8x8xbf16>
    "tpu.trace_start"() <{level = 10 : i32, message = "bqk,bkd->bqd"}> : () -> ()
    %cst_12 = arith.constant dense<0.000000e+00> : vector<8x8x8xf32>
    %33 = tpu.matmul %32, %20, %cst_12 {dimension_numbers = #tpu.dot_dimension_numbers<[2], [1], [1], [2], [0, 0, 0, 1, 1, 2], [0], [0]>} : vector<8x8x8xbf16>, vector<8x8x8xbf16>, vector<8x8x8xf32> -> vector<8x8x8xf32>
    "tpu.trace_stop"() : () -> ()
    %34 = vector.shape_cast %33 : vector<8x8x8xf32> to vector<64x8xf32>
    %35 = arith.truncf %34 : vector<64x8xf32> to vector<64x8xbf16>
    %c0_13 = arith.constant 0 : index
    %c0_14 = arith.constant 0 : index
    %36 = vector.load %arg7[%c0_13, %c0_14] : memref<64x128xbf16, #tpu.memory_space<vmem>>, vector<64x8xbf16>
    tpu.vector_store %arg7[%c0_13, %c0_14], %35 {strides = array<i32>} : memref<64x128xbf16, #tpu.memory_space<vmem>>, vector<64x8xbf16>,
    %37 = vector.extract_strided_slice %8 {offsets = [0, 0, 8], sizes = [8, 8, 8], strides = [1, 1, 1]} : vector<8x8x128xf32> to vector<8x8x8xf32>
    %38 = arith.truncf %37 : vector<8x8x8xf32> to vector<8x8x8xbf16>
    %39 = vector.extract_strided_slice %10 {offsets = [0, 0, 8], sizes = [8, 8, 8], strides = [1, 1, 1]} : vector<8x8x128xf32> to vector<8x8x8xf32>
    %40 = arith.truncf %39 : vector<8x8x8xf32> to vector<8x8x8xbf16>
    %41 = vector.extract_strided_slice %12 {offsets = [0, 0, 8], sizes = [8, 8, 8], strides = [1, 1, 1]} : vector<8x8x128xf32> to vector<8x8x8xf32>
    %42 = arith.truncf %41 : vector<8x8x8xf32> to vector<8x8x8xbf16>
    "tpu.trace_start"() <{level = 10 : i32, message = "bqd,bkd->bqk"}> : () -> ()
    %cst_15 = arith.constant dense<0.000000e+00> : vector<8x8x8xf32>
    %43 = tpu.matmul %38, %40, %cst_15 {dimension_numbers = #tpu.dot_dimension_numbers<[2], [2], [1], [1], [0, 0, 0, 1, 1, 1], [0], [0]>} : vector<8x8x8xbf16>, vector<8x8x8xbf16>, vector<8x8x8xf32> -> vector<8x8x8xf32>
    "tpu.trace_stop"() : () -> ()
    %cst_16 = arith.constant dense<0xFF800000> : vector<8x8xf32>
    %44 = vector.multi_reduction <maximumf>, %43, %cst_16 [2] : vector<8x8x8xf32> to vector<8x8xf32>
    %45 = vector.shape_cast %44 : vector<8x8xf32> to vector<8x8x1xf32>
    %46 = vector.broadcast %45 : vector<8x8x1xf32> to vector<8x8x8xf32>
    %47 = arith.subf %43, %46 : vector<8x8x8xf32>
    %48 = math.exp %47 : vector<8x8x8xf32>
    %cst_17 = arith.constant dense<0.000000e+00> : vector<8x8xf32>
    %49 = vector.multi_reduction <add>, %48, %cst_17 [2] : vector<8x8x8xf32> to vector<8x8xf32>
    %50 = vector.shape_cast %49 : vector<8x8xf32> to vector<8x8x1xf32>
    %51 = tpu.reciprocal %50 {approx = true} : vector<8x8x1xf32> -> vector<8x8x1xf32>
    %52 = vector.broadcast %51 : vector<8x8x1xf32> to vector<8x8x8xf32>
    %53 = arith.mulf %48, %52 : vector<8x8x8xf32>
    %54 = arith.truncf %53 : vector<8x8x8xf32> to vector<8x8x8xbf16>
    "tpu.trace_start"() <{level = 10 : i32, message = "bqk,bkd->bqd"}> : () -> ()
    %cst_18 = arith.constant dense<0.000000e+00> : vector<8x8x8xf32>
    %55 = tpu.matmul %54, %42, %cst_18 {dimension_numbers = #tpu.dot_dimension_numbers<[2], [1], [1], [2], [0, 0, 0, 1, 1, 2], [0], [0]>} : vector<8x8x8xbf16>, vector<8x8x8xbf16>, vector<8x8x8xf32> -> vector<8x8x8xf32>
    "tpu.trace_stop"() : () -> ()
    %56 = vector.shape_cast %55 : vector<8x8x8xf32> to vector<64x8xf32>
    %57 = arith.truncf %56 : vector<64x8xf32> to vector<64x8xbf16>
    %c0_19 = arith.constant 0 : index
    %c8 = arith.constant 8 : index
    %58 = vector.load %arg7[%c0_19, %c8] : memref<64x128xbf16, #tpu.memory_space<vmem>>, vector<64x8xbf16>
    tpu.vector_store %arg7[%c0_19, %c8], %57 {strides = array<i32>} : memref<64x128xbf16, #tpu.memory_space<vmem>>, vector<64x8xbf16>,
    %59 = vector.extract_strided_slice %8 {offsets = [0, 0, 16], sizes = [8, 8, 8], strides = [1, 1, 1]} : vector<8x8x128xf32> to vector<8x8x8xf32>
    %60 = arith.truncf %59 : vector<8x8x8xf32> to vector<8x8x8xbf16>
    %61 = vector.extract_strided_slice %10 {offsets = [0, 0, 16], sizes = [8, 8, 8], strides = [1, 1, 1]} : vector<8x8x128xf32> to vector<8x8x8xf32>
    %62 = arith.truncf %61 : vector<8x8x8xf32> to vector<8x8x8xbf16>
    %63 = vector.extract_strided_slice %12 {offsets = [0, 0, 16], sizes = [8, 8, 8], strides = [1, 1, 1]} : vector<8x8x128xf32> to vector<8x8x8xf32>
    %64 = arith.truncf %63 : vector<8x8x8xf32> to vector<8x8x8xbf16>
    "tpu.trace_start"() <{level = 10 : i32, message = "bqd,bkd->bqk"}> : () -> ()
    %cst_20 = arith.constant dense<0.000000e+00> : vector<8x8x8xf32>
    %65 = tpu.matmul %60, %62, %cst_20 {dimension_numbers = #tpu.dot_dimension_numbers<[2], [2], [1], [1], [0, 0, 0, 1, 1, 1], [0], [0]>} : vector<8x8x8xbf16>, vector<8x8x8xbf16>, vector<8x8x8xf32> -> vector<8x8x8xf32>
    "tpu.trace_stop"() : () -> ()
    %cst_21 = arith.constant dense<0xFF800000> : vector<8x8xf32>
    %66 = vector.multi_reduction <maximumf>, %65, %cst_21 [2] : vector<8x8x8xf32> to vector<8x8xf32>
    %67 = vector.shape_cast %66 : vector<8x8xf32> to vector<8x8x1xf32>
    %68 = vector.broadcast %67 : vector<8x8x1xf32> to vector<8x8x8xf32>
    %69 = arith.subf %65, %68 : vector<8x8x8xf32>
    %70 = math.exp %69 : vector<8x8x8xf32>
    %cst_22 = arith.constant dense<0.000000e+00> : vector<8x8xf32>
    %71 = vector.multi_reduction <add>, %70, %cst_22 [2] : vector<8x8x8xf32> to vector<8x8xf32>
    %72 = vector.shape_cast %71 : vector<8x8xf32> to vector<8x8x1xf32>
    %73 = tpu.reciprocal %72 {approx = true} : vector<8x8x1xf32> -> vector<8x8x1xf32>
    %74 = vector.broadcast %73 : vector<8x8x1xf32> to vector<8x8x8xf32>
    %75 = arith.mulf %70, %74 : vector<8x8x8xf32>
    %76 = arith.truncf %75 : vector<8x8x8xf32> to vector<8x8x8xbf16>
    "tpu.trace_start"() <{level = 10 : i32, message = "bqk,bkd->bqd"}> : () -> ()
    %cst_23 = arith.constant dense<0.000000e+00> : vector<8x8x8xf32>
    %77 = tpu.matmul %76, %64, %cst_23 {dimension_numbers = #tpu.dot_dimension_numbers<[2], [1], [1], [2], [0, 0, 0, 1, 1, 2], [0], [0]>} : vector<8x8x8xbf16>, vector<8x8x8xbf16>, vector<8x8x8xf32> -> vector<8x8x8xf32>
    "tpu.trace_stop"() : () -> ()
    %78 = vector.shape_cast %77 : vector<8x8x8xf32> to vector<64x8xf32>
    %79 = arith.truncf %78 : vector<64x8xf32> to vector<64x8xbf16>
    %c0_24 = arith.constant 0 : index
    %c16 = arith.constant 16 : index
    %80 = vector.load %arg7[%c0_24, %c16] : memref<64x128xbf16, #tpu.memory_space<vmem>>, vector<64x8xbf16>
    tpu.vector_store %arg7[%c0_24, %c16], %79 {strides = array<i32>} : memref<64x128xbf16, #tpu.memory_space<vmem>>, vector<64x8xbf16>,
    %81 = vector.extract_strided_slice %8 {offsets = [0, 0, 24], sizes = [8, 8, 8], strides = [1, 1, 1]} : vector<8x8x128xf32> to vector<8x8x8xf32>
    %82 = arith.truncf %81 : vector<8x8x8xf32> to vector<8x8x8xbf16>
    %83 = vector.extract_strided_slice %10 {offsets = [0, 0, 24], sizes = [8, 8, 8], strides = [1, 1, 1]} : vector<8x8x128xf32> to vector<8x8x8xf32>
    %84 = arith.truncf %83 : vector<8x8x8xf32> to vector<8x8x8xbf16>
    %85 = vector.extract_strided_slice %12 {offsets = [0, 0, 24], sizes = [8, 8, 8], strides = [1, 1, 1]} : vector<8x8x128xf32> to vector<8x8x8xf32>
    %86 = arith.truncf %85 : vector<8x8x8xf32> to vector<8x8x8xbf16>
    "tpu.trace_start"() <{level = 10 : i32, message = "bqd,bkd->bqk"}> : () -> ()
    %cst_25 = arith.constant dense<0.000000e+00> : vector<8x8x8xf32>
    %87 = tpu.matmul %82, %84, %cst_25 {dimension_numbers = #tpu.dot_dimension_numbers<[2], [2], [1], [1], [0, 0, 0, 1, 1, 1], [0], [0]>} : vector<8x8x8xbf16>, vector<8x8x8xbf16>, vector<8x8x8xf32> -> vector<8x8x8xf32>
    "tpu.trace_stop"() : () -> ()
    %cst_26 = arith.constant dense<0xFF800000> : vector<8x8xf32>
    %88 = vector.multi_reduction <maximumf>, %87, %cst_26 [2] : vector<8x8x8xf32> to vector<8x8xf32>
    %89 = vector.shape_cast %88 : vector<8x8xf32> to vector<8x8x1xf32>
    %90 = vector.broadcast %89 : vector<8x8x1xf32> to vector<8x8x8xf32>
    %91 = arith.subf %87, %90 : vector<8x8x8xf32>
    %92 = math.exp %91 : vector<8x8x8xf32>
    %cst_27 = arith.constant dense<0.000000e+00> : vector<8x8xf32>
    %93 = vector.multi_reduction <add>, %92, %cst_27 [2] : vector<8x8x8xf32> to vector<8x8xf32>
    %94 = vector.shape_cast %93 : vector<8x8xf32> to vector<8x8x1xf32>
    %95 = tpu.reciprocal %94 {approx = true} : vector<8x8x1xf32> -> vector<8x8x1xf32>
    %96 = vector.broadcast %95 : vector<8x8x1xf32> to vector<8x8x8xf32>
    %97 = arith.mulf %92, %96 : vector<8x8x8xf32>
    %98 = arith.truncf %97 : vector<8x8x8xf32> to vector<8x8x8xbf16>
    "tpu.trace_start"() <{level = 10 : i32, message = "bqk,bkd->bqd"}> : () -> ()
    %cst_28 = arith.constant dense<0.000000e+00> : vector<8x8x8xf32>
    %99 = tpu.matmul %98, %86, %cst_28 {dimension_numbers = #tpu.dot_dimension_numbers<[2], [1], [1], [2], [0, 0, 0, 1, 1, 2], [0], [0]>} : vector<8x8x8xbf16>, vector<8x8x8xbf16>, vector<8x8x8xf32> -> vector<8x8x8xf32>
    "tpu.trace_stop"() : () -> ()
    %100 = vector.shape_cast %99 : vector<8x8x8xf32> to vector<64x8xf32>
    %101 = arith.truncf %100 : vector<64x8xf32> to vector<64x8xbf16>
    %c0_29 = arith.constant 0 : index
    %c24 = arith.constant 24 : index
    %102 = vector.load %arg7[%c0_29, %c24] : memref<64x128xbf16, #tpu.memory_space<vmem>>, vector<64x8xbf16>
    tpu.vector_store %arg7[%c0_29, %c24], %101 {strides = array<i32>} : memref<64x128xbf16, #tpu.memory_space<vmem>>, vector<64x8xbf16>,
    %c0_30 = arith.constant 0 : index
    %c0_31 = arith.constant 0 : index
    %103 = vector.load %arg7[%c0_30, %c0_31] : memref<64x128xbf16, #tpu.memory_space<vmem>>, vector<64x128xbf16>
    %c0_32 = arith.constant 0 : index
    %c0_33 = arith.constant 0 : index
    %104 = vector.load %arg4[%c0_32, %c0_33] : memref<128x128xbf16, #tpu.memory_space<vmem>>, vector<128x128xbf16>
    %cst_34 = arith.constant dense<0.000000e+00> : vector<64x128xf32>
    %105 = tpu.matmul %103, %104, %cst_34 {dimension_numbers = #tpu.dot_dimension_numbers<[1], [0], [0], [1], [0, 0, 1, 1], [], []>} : vector<64x128xbf16>, vector<128x128xbf16>, vector<64x128xf32> -> vector<64x128xf32>
    %c0_35 = arith.constant 0 : index
    %c0_36 = arith.constant 0 : index
    %106 = vector.load %arg5[%c0_35, %c0_36] : memref<1x128xf32, #tpu.memory_space<vmem>>, vector<1x128xf32>
    %107 = vector.broadcast %106 : vector<1x128xf32> to vector<64x128xf32>
    %108 = arith.addf %105, %107 : vector<64x128xf32>
    %109 = vector.shape_cast %108 : vector<64x128xf32> to vector<8x8x128xf32>
    %c0_37 = arith.constant 0 : index
    %c0_38 = arith.constant 0 : index
    %c0_39 = arith.constant 0 : index
    %110 = vector.load %arg6[%c0_37, %c0_38, %c0_39] : memref<8x8x128xf32, #tpu.memory_space<vmem>>, vector<8x8x128xf32>
    tpu.vector_store %arg6[%c0_37, %c0_38, %c0_39], %109 {strides = array<i32>} : memref<8x8x128xf32, #tpu.memory_space<vmem>>, vector<8x8x128xf32>,
    return
  }
  func.func @transform_0(%arg0: i32) -> (i32, i32, i32) {
    %c0_i32 = arith.constant 0 : i32
    %c0_i32_0 = arith.constant 0 : i32
    %c0_i32_1 = arith.constant 0 : i32
    return %arg0, %c0_i32, %c0_i32_0 : i32, i32, i32
  }
  func.func @transform_1(%arg0: i32) -> (i32, i32) {
    %c0_i32 = arith.constant 0 : i32
    %c0_i32_0 = arith.constant 0 : i32
    %c0_i32_1 = arith.constant 0 : i32
    return %c0_i32, %c0_i32_0 : i32, i32
  }
  func.func @transform_2(%arg0: i32) -> (i32, i32) {
    %c0_i32 = arith.constant 0 : i32
    %c0_i32_0 = arith.constant 0 : i32
    %c0_i32_1 = arith.constant 0 : i32
    return %c0_i32, %c0_i32_0 : i32, i32
  }
  func.func @transform_3(%arg0: i32) -> (i32, i32) {
    %c0_i32 = arith.constant 0 : i32
    %c0_i32_0 = arith.constant 0 : i32
    %c0_i32_1 = arith.constant 0 : i32
    return %c0_i32, %c0_i32_0 : i32, i32
  }
  func.func @transform_4(%arg0: i32) -> (i32, i32) {
    %c0_i32 = arith.constant 0 : i32
    %c0_i32_0 = arith.constant 0 : i32
    %c0_i32_1 = arith.constant 0 : i32
    return %c0_i32, %c0_i32_0 : i32, i32
  }
  func.func @transform_5(%arg0: i32) -> (i32, i32, i32) {
    %c0_i32 = arith.constant 0 : i32
    %c0_i32_0 = arith.constant 0 : i32
    %c0_i32_1 = arith.constant 0 : i32
    return %arg0, %c0_i32, %c0_i32_0 : i32, i32, i32
  }
}

</mosaic_0001>

<bundles_post_ra>
// kernel: tpu_custom_call.1
= control target key start
LH: loop header
LB: loop body
LE: loop exit
PB: predicated region body
PF: predicated region fallthrough
CT: control target
= control target key end

     0   :  { %10 = vsyncpa [#allocation4], 0  ;;  %s6419_s0 = inlined_call_operand.hbm [shape: bf16[8,8,128], index: 0, kind: input, shape index: {}]   ;;  %s6420_s1 = inlined_call_operand.hbm [shape: bf16[128,384], index: 1, kind: input, shape index: {}]   ;;  %s6421_s2 = inlined_call_operand.vmem [shape: f32[1,384], index: 2, kind: input, shape index: {}]   ;;  %s6422_s3 = inlined_call_operand.hbm [shape: bf16[128,128], index: 3, kind: input, shape index: {}]   ;;  %s6423_s4 = inlined_call_operand.vmem [shape: f32[1,128], index: 4, kind: input, shape index: {}]   ;;  %s6424_s5 = inlined_call_operand.hbm [shape: f32[8,8,128], index: 5, kind: output, shape index: {}]  }
   0x1   :  { %11 = vsyncpa [#allocation7], 0 }
   0x2   :  { %12 = vsyncpa [#allocation5], 0  ;;  %s5379_s18 = smov [#allocation6]  }
   0x3   :  { %s30_s19 = sshll.u32 %s5379_s18, 4  ;;  %s31_s19 = int_to_ptr.vmem [resolvable:$true] %s30_s19 }
   0x4   :  { %s5301_s20 = scalar_lea.vmem %s31_s19, 3072  ;;  %p5306_p1 = scmp.lt.s32.totalorder %s31_s19, %s31_s19 }
   0x5   :  { %p5302_p0 = scmp.ne.s32.totalorder %s31_s19, %s5301_s20  ;;  %p5307_p2 = scmp.lt.s32.totalorder %s5301_s20, %s5301_s20 }
   0x7   :  { %p5308_p3 = por %p5307_p2, %p5306_p1 }
   0x9   :  { %p5309_p4 = pnand %p5308_p3, %p5302_p0 }
   0xb   :  { %5312 = shalt.err (!%p5309_p4)
}
   0xc   :  { %s5380_s21 = smov 192   ;;  %s5381_s22 = smov 12  }
   0xd   :  { %36 = dma.hbm_to_vmem [thread:$0]  %s6420_s1, 3072, %s31_s19, [#allocation7], %s5380_s21, %s5380_s21, %s5381_s22  }
   0xe   :  { %s5382_s25 = smov [#allocation3]  }
   0xf   :  { %s18_s26 = sshll.u32 %s5382_s25, 4  ;;  %s19_s26 = int_to_ptr.vmem [resolvable:$true] %s18_s26 }
  0x10   :  { %s5321_s27 = scalar_lea.vmem %s19_s26, 512  ;;  %p5326_p6 = scmp.lt.s32.totalorder %s19_s26, %s19_s26 }
  0x11   :  { %p5322_p5 = scmp.ne.s32.totalorder %s19_s26, %s5321_s27  ;;  %p5327_p7 = scmp.lt.s32.totalorder %s5321_s27, %s5321_s27 }
  0x13   :  { %p5328_p8 = por %p5327_p7, %p5326_p6 }
  0x15   :  { %p5329_p9 = pnand %p5328_p8, %p5322_p5 }
  0x17   :  { %5332 = shalt.err (!%p5329_p9)
}
  0x18   :  { %s5383_s28 = smov 64   ;;  %s5384_s29 = smov 4  }
  0x19   :  { %24 = dma.hbm_to_vmem [thread:$0]  %s6419_s0, 512, %s19_s26, [#allocation4], %s5383_s28, %s5383_s28, %s5384_s29  }
  0x1a   :  { %s5385_s7 = smov [#allocation8]  }
  0x1b   :  { %s44_s8 = sshll.u32 %s5385_s7, 4  ;;  %s45_s8 = int_to_ptr.vmem [resolvable:$true] %s44_s8 }
  0x1c   :  { %s5341_s1 = scalar_lea.vmem %s45_s8, 1024  ;;  %p5346_p11 = scmp.lt.s32.totalorder %s45_s8, %s45_s8 }
  0x1d   :  { %p5342_p10 = scmp.ne.s32.totalorder %s45_s8, %s5341_s1  ;;  %p5347_p12 = scmp.lt.s32.totalorder %s5341_s1, %s5341_s1 }
  0x1f   :  { %p5348_p13 = por %p5347_p12, %p5346_p11 }
  0x21   :  { %p5349_p0 = pnand %p5348_p13, %p5342_p10 }
  0x23   :  { %5352 = shalt.err (!%p5349_p0)
}
  0x24   :  { %50 = dma.hbm_to_vmem [thread:$0]  %s6422_s3, 1024, %s45_s8, [#allocation7], %s5383_s28, %s5383_s28, %s5384_s29  }
  0x25   :  { %5373 = dma.done.wait [#allocation4], 512  }
  0x26   :  { %5374 = vsyncadd [#allocation4], 4294966784 }
  0x27   :  { %5375 = dma.done.wait [#allocation7], 4096  }
  0x28   :  { %5376 = vsyncadd [#allocation7], 4294963200  ;;  %v5386_v0 = vmov 0   ;;  %v5117_v1 = vld [vmem:[#allocation6 + $0xac] ss:$12 sps:$4 sm:$0xff]   ;;  %v5141_v9 = vld [vmem:[#allocation3] sm:$0xff]   ;;  %v105_v30 = vlaneseq }
  0x29   :  { %304 = vmatprep.mubr.bf16.mxu1 %v5386_v0  ;;  %410 = vst [vmem:[#allocation2] sm:$0xf] %v5386_v0  ;;  %411 = vst [vmem:[#allocation2 + $0x4] sm:$0xf] %v5386_v0  ;;  %v5119_v2 = vld [vmem:[#allocation6 + $0xa8] ss:$12 sps:$4 sm:$0xff]   ;;  %272 = vmatprep.subr.bf16.mxu1 %v5117_v1 }
  0x2a   :  { %412 = vst [vmem:[#allocation2 + $0x8] sm:$0xf] %v5386_v0  ;;  %413 = vst [vmem:[#allocation2 + $0xc] sm:$0xf] %v5386_v0  ;;  %v5120_v3 = vld [vmem:[#allocation6 + $0x94] ss:$12 sps:$4 sm:$0xff]   ;;  %273 = vmatpush1.bf16.msra.mxu1 %v5119_v2  ;;  %4683 = vmatprep.mubr.bf16.mxu0 %v5141_v9 }
  0x2b   :  { %414 = vst [vmem:[#allocation2 + $0x10] sm:$0xf] %v5386_v0  ;;  %415 = vst [vmem:[#allocation2 + $0x14] sm:$0xf] %v5386_v0  ;;  %v5122_v4 = vld [vmem:[#allocation6 + $0x90] ss:$12 sps:$4 sm:$0xff]   ;;  %274 = vmatprep.subr.bf16.mxu1 %v5120_v3 }
  0x2c   :  { %416 = vst [vmem:[#allocation2 + $0x18] sm:$0xf] %v5386_v0  ;;  %417 = vst [vmem:[#allocation2 + $0x1c] sm:$0xf] %v5386_v0  ;;  %v5123_v5 = vld [vmem:[#allocation6 + $0x7c] ss:$12 sps:$4 sm:$0xff]  }
  0x2d   :  { %v5125_v6 = vld [vmem:[#allocation6 + $0x78] ss:$12 sps:$4 sm:$0xff]   ;;  %v5128_v8 = vld [vmem:[#allocation6 + $0x60] ss:$12 sps:$4 sm:$0xff]   ;;  %v5131_v11 = vld [vmem:[#allocation6 + $0x48] ss:$12 sps:$4 sm:$0xff]  }
  0x2e   :  { %275 = vmatpush1.bf16.msra.mxu1 %v5122_v4  ;;  %v5126_v7 = vld [vmem:[#allocation6 + $0x64] ss:$12 sps:$4 sm:$0xff]   ;;  %v5129_v10 = vld [vmem:[#allocation6 + $0x4c] ss:$12 sps:$4 sm:$0xff]   ;;  %v5132_v12 = vld [vmem:[#allocation6 + $0x34] ss:$12 sps:$4 sm:$0xff]  }
  0x2f   :  { %276 = vmatprep.subr.bf16.mxu1 %v5123_v5  ;;  %v5145_v13 = vld [vmem:[#allocation6 + $0xb0] ss:$12 sps:$4 sm:$0xff]   ;;  %v5146_v14 = vld [vmem:[#allocation6 + $0x98] ss:$12 sps:$4 sm:$0xff]   ;;  %v5147_v16 = vld [vmem:[#allocation6 + $0x80] ss:$12 sps:$4 sm:$0xff]  }
  0x30   :  { %4667 = vmatprep.subr.bf16.mxu0 %v5145_v13  ;;  %v5134_v15 = vld [vmem:[#allocation6 + $0x30] ss:$12 sps:$4 sm:$0xff]   ;;  %v5137_v18 = vld [vmem:[#allocation6 + $0x18] ss:$12 sps:$4 sm:$0xff]   ;;  %v5148_v19 = vld [vmem:[#allocation6 + $0x68] ss:$12 sps:$4 sm:$0xff]  }
  0x31   :  { %4668 = vmatpush3.bf16.msra.mxu0 %v5145_v13  ;;  %v5135_v17 = vld [vmem:[#allocation6 + $0x1c] ss:$12 sps:$4 sm:$0xff]   ;;  %v5138_v20 = vld [vmem:[#allocation6 + $0x4] ss:$12 sps:$4 sm:$0xff]   ;;  %v5140_v21 = vld [vmem:[#allocation6] ss:$12 sps:$4 sm:$0xff]  }
  0x32   :  { %277 = vmatpush1.bf16.msra.mxu1 %v5125_v6  ;;  %4669 = vmatprep.subr.bf16.mxu0 %v5146_v14  ;;  %v5149_v22 = vld [vmem:[#allocation6 + $0x50] ss:$12 sps:$4 sm:$0xff]   ;;  %v5150_v23 = vld [vmem:[#allocation6 + $0x38] ss:$12 sps:$4 sm:$0xff]   ;;  %v5151_v24 = vld [vmem:[#allocation6 + $0x20] ss:$12 sps:$4 sm:$0xff]  }
  0x33   :  { %278 = vmatprep.subr.bf16.mxu1 %v5126_v7  ;;  %v5142_v25 = vld [vmem:[#allocation3 + $0x8] sm:$0xff]   ;;  %v5143_v26 = vld [vmem:[#allocation3 + $0x10] sm:$0xff]   ;;  %v5144_v27 = vld [vmem:[#allocation3 + $0x18] sm:$0xff]   ;;  %v5387_v29 = vmov 0.0   ;;  %vm5388_vm0 = vmmov 0   ;;  %v5454_v31 = vshrl.u32 %v105_v30, 7 }
  0x34   :  { %v5152_v28 = vld [vmem:[#allocation6 + $0x8] ss:$12 sps:$4 sm:$0xff]   ;;  %v5460_v33 = vld [vmem:[%s6421_s2] sm:$0x7]  ;;  %vm442_vm1 = vcmask 64512   ;;  %vm910_vm2 = vcmask 1043456  }
  0x35   :  { %4670 = vmatpush3.bf16.msra.mxu0 %v5146_v14  ;;  %v111_v32 = vsub.s32 1, %v5454_v31  ;;  %v107_v36 = vsub.s32 0, %v5454_v31  ;;  %v115_v30 = vsub.s32 2, %v5454_v31  ;;  %s5389_s2 = smov 120   ;;  %vm1308_vm3 = vcmask 60416   ;;  %s5390_s11 = smov 112  }
  0x36   :  { %279 = vmatpush1.bf16.msra.mxu1 %v5128_v8  ;;  %4671 = vmatprep.subr.bf16.mxu0 %v5147_v16  ;;  %s5391_s12 = smov 104   ;;  %s5392_s13 = smov 8   ;;  %vm2269_vm4 = vcmask 126016   ;;  %vm3206_vm5 = vcmask 191616   ;;  %vm4143_vm6 = vcmask 257216  }
  0x37   :  { %280 = vmatprep.subr.bf16.mxu1 %v5129_v10  ;;  %v5463_v34 = vrot.slane %v5460_v33, %v111_v32  ;;  %v5468_v40 = vrot.slane %v5460_v33, %v107_v36  ;;  %v5575_v32 = vrot.slane %v5460_v33, %v115_v30  ;;  %s5393_s14 = smov 16   ;;  %s5394_s15 = smov 24  }
  0x38   :  { %s5395_s18 = smov [#allocation9]  }
  0x39   :  { %4672 = vmatpush3.bf16.msra.mxu0 %v5147_v16 }
  0x3a   :  { %281 = vmatpush1.bf16.msra.mxu1 %v5131_v11  ;;  %4673 = vmatprep.subr.bf16.mxu0 %v5148_v19 }
  0x3b   :  { %282 = vmatprep.subr.bf16.mxu1 %v5132_v12 }
  0x3d   :  { %4674 = vmatpush3.bf16.msra.mxu0 %v5148_v19 }
  0x3e   :  { %283 = vmatpush1.bf16.msra.mxu1 %v5134_v15  ;;  %4675 = vmatprep.subr.bf16.mxu0 %v5149_v22 }
  0x3f   :  { %284 = vmatprep.subr.bf16.mxu1 %v5135_v17 }
  0x41   :  { %4676 = vmatpush3.bf16.msra.mxu0 %v5149_v22 }
  0x42   :  { %285 = vmatpush1.bf16.msra.mxu1 %v5137_v18  ;;  %4677 = vmatprep.subr.bf16.mxu0 %v5150_v23 }
  0x43   :  { %286 = vmatprep.subr.bf16.mxu1 %v5138_v20 }
  0x45   :  { %4678 = vmatpush3.bf16.msra.mxu0 %v5150_v23 }
  0x46   :  { %287 = vmatpush1.bf16.msra.mxu1 %v5140_v21  ;;  %4679 = vmatprep.subr.bf16.mxu0 %v5151_v24 }
  0x47   :  { %4691 = vmatprep.subr.bf16.mxu1 %v5387_v29 }
  0x49   :  { %305 = vmatmul.mubr.bf16.vlgmr.msra.gmra.mxu1 %v5141_v9  ;;  %4680 = vmatpush3.bf16.msra.mxu0 %v5151_v24 }
  0x4a   :  { %314 = vmatprep.mubr.bf16.mxu1 %v5386_v0  ;;  %4681 = vmatprep.subr.bf16.mxu0 %v5152_v28 }
  0x4d   :  { %4682 = vmatpush3.bf16.msra.mxu0 %v5152_v28 }
  0x4e   :  { %4703 = vmatprep.subr.bf16.mxu0 %v5387_v29 }
  0x50   :  { %4684 = vmatmul.mubr.bf16.vlgmr.msra.gmra.mxu0 %v5142_v25 }
  0x51   :  { %315 = vmatmul.mubr.bf16.gmra.mxu1 %v5142_v25  ;;  %4687 = vmatprep.mubr.bf16.mxu0 %v5143_v26 }
  0x52   :  { %324 = vmatprep.mubr.bf16.mxu1 %v5386_v0 }
  0x58   :  { %4688 = vmatmul.mubr.bf16.gmra.mxu0 %v5144_v27 }
  0x59   :  { %325 = vmatmul.mubr.bf16.gmra.mxu1 %v5143_v26  ;;  %4705 = vmatprep.mubr.msk.bf16.mxu0 %vm5388_vm0, %v5387_v29 }
  0x5a   :  { %334 = vmatprep.mubr.bf16.mxu1 %v5386_v0 }
  0x61   :  { %335 = vmatmul.mubr.bf16.gmra.mxu1 %v5144_v27 }
  0x62   :  { %4693 = vmatprep.mubr.msk.bf16.mxu1 %vm5388_vm0, %v5387_v29 }
 0x109   :  { %v306_v35 = vpop.f32.mrf.mxu1 }
 0x10a   :  { %v307_v46 = vadd.f32 %v306_v35, %v5468_v40 }
 0x10b   :  { %v308_v37 = vpop.f32.mrf.mxu1 }
 0x10c   :  { %v309_v38 = vadd.f32 %v308_v37, %v5463_v34  ;;  %v5480_v51 = vpack.c.bf16 %v307_v46, %v307_v46 }
 0x10d   :  { %v310_v39 = vpop.f32.mrf.mxu1 }
 0x10e   :  { %v5470_v41 = vpack.c.bf16 %v309_v38, %v309_v38  ;;  %v311_v58 = vadd.f32 %v310_v39, %v5468_v40 }
 0x10f   :  { %v312_v42 = vpop.f32.mrf.mxu1 }
 0x110   :  { %v313_v43 = vadd.f32 %v312_v42, %v5463_v34  ;;  %v447_v44 = vsel %vm442_vm1, %v5470_v41, 0  ;;  %v5500_v0 = vpack.c.bf16 %v311_v58, %v311_v58 }
 0x111   :  { %v316_v45 = vpop.f32.mrf.mxu1  ;;  %4692 = vmatpush3.bf16.xpose.msra.mxu1 %v447_v44 }
 0x112   :  { %4697 = vmatprep.subr.bf16.mxu1 %v5387_v29  ;;  %v5477_v48 = vpack.c.bf16 %v313_v43, %v313_v43  ;;  %v317_v59 = vadd.f32 %v316_v45, %v5468_v40 }
 0x113   :  { %v318_v47 = vpop.f32.mrf.mxu1 }
 0x114   :  { %v319_v49 = vadd.f32 %v318_v47, %v5463_v34  ;;  %v493_v55 = vsel %vm442_vm1, %v5477_v48, 0  ;;  %v5502_v1 = vpack.c.bf16 %v317_v59, %v317_v59 }
 0x115   :  { %v320_v50 = vpop.f32.mrf.mxu1 }
 0x116   :  { %v5482_v52 = vpack.c.bf16 %v319_v49, %v319_v49  ;;  %v321_v8 = vadd.f32 %v320_v50, %v5468_v40 }
 0x117   :  { %v322_v53 = vpop.f32.mrf.mxu1 }
 0x118   :  { %v323_v54 = vadd.f32 %v322_v53, %v5463_v34  ;;  %4694 = vmatmul.mubr.msk.bf16.vlgmr.msra.gmra.mxu1 %vm442_vm1, %v5480_v51  ;;  %v539_v56 = vsel %vm442_vm1, %v5482_v52, 0  ;;  %v5526_v14 = vpack.c.bf16 %v321_v8, %v321_v8 }
 0x119   :  { %v326_v57 = vpop.f32.mrf.mxu1  ;;  %4698 = vmatpush3.bf16.xpose.msra.mxu1 %v493_v55  ;;  %4704 = vmatpush3.bf16.xpose.msra.mxu0 %v539_v56 }
 0x11a   :  { %4699 = vmatprep.mubr.msk.bf16.mxu1 %vm5388_vm0, %v5387_v29  ;;  %4709 = vmatprep.subr.bf16.mxu1 %v5387_v29  ;;  %v5497_v61 = vpack.c.bf16 %v323_v54, %v323_v54  ;;  %v327_v9 = vadd.f32 %v326_v57, %v5468_v40 }
 0x11b   :  { %v328_v60 = vpop.f32.mrf.mxu1  ;;  %4715 = vmatprep.subr.bf16.mxu0 %v5387_v29 }
 0x11c   :  { %v329_v62 = vadd.f32 %v328_v60, %v5463_v34  ;;  %v585_v5 = vsel %vm442_vm1, %v5497_v61, 0  ;;  %v5528_v15 = vpack.c.bf16 %v327_v9, %v327_v9 }
 0x11d   :  { %v330_v63 = vpop.f32.mrf.mxu1 }
 0x11e   :  { %v5504_v2 = vpack.c.bf16 %v329_v62, %v329_v62  ;;  %v331_v22 = vadd.f32 %v330_v63, %v5468_v40 }
 0x11f   :  { %v332_v3 = vpop.f32.mrf.mxu1 }
 0x120   :  { %v333_v4 = vadd.f32 %v332_v3, %v5463_v34  ;;  %4700 = vmatmul.mubr.msk.bf16.vlgmr.msra.gmra.mxu1 %vm442_vm1, %v5500_v0  ;;  %4706 = vmatmul.mubr.msk.bf16.vlgmr.msra.gmra.mxu0 %vm442_vm1, %v5502_v1  ;;  %v631_v6 = vsel %vm442_vm1, %v5504_v2, 0  ;;  %v5553_v25 = vpack.c.bf16 %v331_v22, %v331_v22 }
 0x121   :  { %v336_v7 = vpop.f32.mrf.mxu1  ;;  %4710 = vmatpush3.bf16.xpose.msra.mxu1 %v585_v5  ;;  %4716 = vmatpush3.bf16.xpose.msra.mxu0 %v631_v6 }
 0x122   :  { %4711 = vmatprep.mubr.msk.bf16.mxu1 %vm5388_vm0, %v5387_v29  ;;  %4717 = vmatprep.mubr.msk.bf16.mxu0 %vm5388_vm0, %v5387_v29  ;;  %v5523_v11 = vpack.c.bf16 %v333_v4, %v333_v4  ;;  %v337_v18 = vadd.f32 %v336_v7, %v5468_v40 }
 0x123   :  { %v338_v10 = vpop.f32.mrf.mxu1  ;;  %4721 = vmatprep.subr.bf16.mxu1 %v5387_v29  ;;  %4727 = vmatprep.subr.bf16.mxu0 %v5387_v29 }
 0x124   :  { %v339_v12 = vadd.f32 %v338_v10, %v5463_v34  ;;  %v677_v19 = vsel %vm442_vm1, %v5523_v11, 0  ;;  %v5551_v24 = vpack.c.bf16 %v337_v18, %v337_v18 }
 0x125   :  { %v340_v13 = vpop.f32.mrf.mxu1 }
 0x126   :  { %v5530_v16 = vpack.c.bf16 %v339_v12, %v339_v12  ;;  %v341_v27 = vadd.f32 %v340_v13, %v5468_v40 }
 0x127   :  { %v342_v17 = vpop.f32.mrf.mxu1 }
 0x128   :  { %4712 = vmatmul.mubr.msk.bf16.vlgmr.msra.gmra.mxu1 %vm442_vm1, %v5526_v14  ;;  %4718 = vmatmul.mubr.msk.bf16.vlgmr.msra.gmra.mxu0 %vm442_vm1, %v5528_v15  ;;  %v723_v20 = vsel %vm442_vm1, %v5530_v16, 0  ;;  %v343_v21 = vadd.f32 %v342_v17, %v5463_v34  ;;  %v5567_v28 = vpack.c.bf16 %v341_v27, %v341_v27  ;;  %v4685_v34 = vpop.f32.mrf.mxu0 }
 0x129   :  { %4722 = vmatpush3.bf16.xpose.msra.mxu1 %v677_v19  ;;  %4728 = vmatpush3.bf16.xpose.msra.mxu0 %v723_v20  ;;  %v5578_v35 = vadd.f32 %v4685_v34, %v5575_v32 }
 0x12a   :  { %v5543_v23 = vpack.c.bf16 %v343_v21, %v343_v21  ;;  %4723 = vmatprep.mubr.msk.bf16.mxu1 %vm5388_vm0, %v5387_v29  ;;  %4729 = vmatprep.mubr.msk.bf16.mxu0 %vm5388_vm0, %v5387_v29  ;;  %v379_v36 = vpop.f32.mrf.mxu0 }
 0x12b   :  { %4733 = vmatprep.subr.bf16.mxu1 %v5387_v29  ;;  %4739 = vmatprep.subr.bf16.mxu0 %v5387_v29  ;;  %v380_v38 = vadd.f32 %v379_v36, %v5575_v32 }
 0x12c   :  { %v769_v26 = vsel %vm442_vm1, %v5543_v23, 0  ;;  %v4686_v37 = vpop.f32.mrf.mxu0 }
 0x12d   :  { %v5582_v39 = vadd.f32 %v4686_v37, %v5575_v32  ;;  %v5585_v44 = vpack.c.bf16 %v380_v38, %v380_v38 }
 0x12e   :  { %v382_v40 = vpop.f32.mrf.mxu0 }
 0x12f   :  { %v383_v42 = vadd.f32 %v382_v40, %v5575_v32  ;;  %v912_v50 = vsel %vm910_vm2, %v5585_v44, 0 }
 0x130   :  { %4724 = vmatmul.mubr.msk.bf16.vlgmr.msra.gmra.mxu1 %vm442_vm1, %v5553_v25  ;;  %4730 = vmatmul.mubr.msk.bf16.vlgmr.msra.gmra.mxu0 %vm442_vm1, %v5551_v24  ;;  %v4689_v43 = vpop.f32.mrf.mxu0 }
 0x131   :  { %4734 = vmatpush3.bf16.xpose.msra.mxu1 %v769_v26  ;;  %4735 = vmatprep.mubr.msk.bf16.mxu1 %vm5388_vm0, %v5387_v29  ;;  %v5587_v31 = vpack.c.bf16 %v383_v42, %v383_v42  ;;  %v5590_v33 = vadd.f32 %v4689_v43, %v5575_v32 }
 0x132   :  { %4745 = vmatprep.subr.bf16.mxu1 %v5387_v29  ;;  %4741 = vmatprep.mubr.msk.bf16.mxu0 %vm5388_vm0, %v5387_v29  ;;  %v395_v45 = vpop.f32.mrf.mxu0 }
 0x133   :  { %v5593_v46 = vadd.f32 %v395_v45, %v5575_v32  ;;  %v958_v53 = vsel %vm910_vm2, %v5587_v31, 0  ;;  %4740 = vmatpush3.bf16.msra.mxu0 %v912_v50 }
 0x134   :  { %v4690_v47 = vpop.f32.mrf.mxu0  ;;  %4751 = vmatprep.subr.bf16.mxu0 %v5387_v29 }
 0x135   :  { %v5596_v49 = vadd.f32 %v4690_v47, %v5575_v32 }
 0x136   :  { %v5605_v58 = vpop.f32.mrf.mxu0 }
 0x138   :  { %4736 = vmatmul.mubr.msk.bf16.vlgmr.msra.gmra.mxu1 %vm442_vm1, %v5567_v28 }
 0x139   :  { %4747 = vmatprep.mubr.msk.bf16.mxu1 %vm5388_vm0, %v5387_v29  ;;  %4746 = vmatpush3.bf16.msra.mxu1 %v958_v53 }
 0x13a   :  { %4757 = vmatprep.subr.bf16.mxu1 %v5387_v29 }
 0x1d8   :  { %v483_v54 = vpop.f32.mrf.mxu1 }
 0x1d9   :  { %v811_v55 = vsel %vm442_vm1, %v483_v54, -inf }
 0x1da   :  { %812 = vmax.xlane.f32.xlu0 %v811_v55  ;;  %v4695_v56 = vpop.f32.mrf.mxu1 }
 0x1dc   :  { %v486_v57 = vpop.f32.mrf.mxu1 }
 0x1de   :  { %v4696_v59 = vpop.f32.mrf.mxu1 }
 0x1e0   :  { %v529_v60 = vpop.f32.mrf.mxu1  ;;  %v575_v62 = vpop.f32.mrf.mxu0 }
 0x1e1   :  { %v817_v63 = vsel %vm442_vm1, %v575_v62, -inf  ;;  %v814_v3 = vsel %vm442_vm1, %v529_v60, -inf }
 0x1e2   :  { %818 = vmax.xlane.f32.xlu1 %v817_v63  ;;  %v4707_v4 = vpop.f32.mrf.mxu0  ;;  %815 = vmax.xlane.f32.xlu0 %v814_v3  ;;  %v4701_v5 = vpop.f32.mrf.mxu1 }
 0x1e4   :  { %v532_v6 = vpop.f32.mrf.mxu1  ;;  %v578_v7 = vpop.f32.mrf.mxu0 }
 0x1e6   :  { %v4702_v8 = vpop.f32.mrf.mxu1  ;;  %v4708_v9 = vpop.f32.mrf.mxu0 }
 0x1e8   :  { %v621_v10 = vpop.f32.mrf.mxu1  ;;  %v667_v12 = vpop.f32.mrf.mxu0 }
 0x1e9   :  { %v823_v13 = vsel %vm442_vm1, %v667_v12, -inf  ;;  %v820_v17 = vsel %vm442_vm1, %v621_v10, -inf }
 0x1ea   :  { %v4719_v18 = vpop.f32.mrf.mxu0  ;;  %824 = vmax.xlane.f32.xlu0 %v823_v13  ;;  %821 = vmax.xlane.f32.xlu1 %v820_v17  ;;  %v4713_v19 = vpop.f32.mrf.mxu1 }
 0x1ec   :  { %v624_v20 = vpop.f32.mrf.mxu1  ;;  %v670_v21 = vpop.f32.mrf.mxu0 }
 0x1ee   :  { %v4714_v22 = vpop.f32.mrf.mxu1  ;;  %v4720_v26 = vpop.f32.mrf.mxu0 }
 0x1f0   :  { %v713_v27 = vpop.f32.mrf.mxu1  ;;  %v759_v30 = vpop.f32.mrf.mxu0 }
 0x1f1   :  { %v829_v34 = vsel %vm442_vm1, %v759_v30, -inf  ;;  %v826_v36 = vsel %vm442_vm1, %v713_v27, -inf }
 0x1f2   :  { %830 = vmax.xlane.f32.xlu0 %v829_v34  ;;  %827 = vmax.xlane.f32.xlu1 %v826_v36  ;;  %v4725_v37 = vpop.f32.mrf.mxu1  ;;  %v4731_v38 = vpop.f32.mrf.mxu0 }
 0x1f4   :  { %v716_v40 = vpop.f32.mrf.mxu1  ;;  %v762_v42 = vpop.f32.mrf.mxu0 }
 0x1f6   :  { %v4726_v43 = vpop.f32.mrf.mxu1  ;;  %v4732_v45 = vpop.f32.mrf.mxu0 }
 0x1f8   :  { %v5613_v47 = vpop.f32.mrf.mxu1 }
 0x1f9   :  { %v832_v50 = vsel %vm442_vm1, %v5613_v47, -inf }
 0x1fa   :  { %833 = vmax.xlane.f32.xlu1 %v832_v50  ;;  %v4737_v53 = vpop.f32.mrf.mxu1 }
 0x1fc   :  { %v808_v55 = vpop.f32.mrf.mxu1 }
 0x1fe   :  { %v4738_v56 = vpop.f32.mrf.mxu1 }
 0x263   :  { %v813_v57 = vpop.xlane.xlu0 %812 }
 0x264   :  { %v835_v59 = vsub.f32 %v483_v54, %v813_v57 }
 0x266   :  { %v843_v63 = vmul.f32 1.442695, %v835_v59 }
 0x268   :  { %5165 = vpow2.f32 %v843_v63  ;;  %v5688_v63 = vpack.c.bf16 %v5578_v35, %v5578_v35 }
 0x26b   :  { %v819_v3 = vpop.xlane.xlu1 %818  ;;  %v816_v4 = vpop.xlane.xlu0 %815 }
 0x26c   :  { %v837_v5 = vsub.f32 %v575_v62, %v819_v3  ;;  %v836_v6 = vsub.f32 %v529_v60, %v816_v4  ;;  %v5694_v3 = vpack.c.bf16 %v5582_v39, %v5582_v39  ;;  %v1004_v39 = vsel %vm910_vm2, %v5688_v63, 0 }
 0x26e   :  { %v847_v7 = vmul.f32 1.442695, %v837_v5  ;;  %v845_v8 = vmul.f32 1.442695, %v836_v6 }
 0x270   :  { %5167 = vpow2.f32 %v847_v7 }
 0x271   :  { %5169 = vpow2.f32 %v845_v8 }
 0x273   :  { %v825_v9 = vpop.xlane.xlu0 %824  ;;  %v822_v13 = vpop.xlane.xlu1 %821 }
 0x274   :  { %v839_v17 = vsub.f32 %v667_v12, %v825_v9  ;;  %v838_v18 = vsub.f32 %v621_v10, %v822_v13 }
 0x275   :  { %v5617_v19 = vpop.eup %5165 }
 0x276   :  { %v851_v20 = vmul.f32 1.442695, %v839_v17  ;;  %v849_v21 = vmul.f32 1.442695, %v838_v18  ;;  %v859_v54 = vsel %vm442_vm1, %v5617_v19, 0.0 }
 0x277   :  { %860 = vadd.xlane.f32.xlu0 %v859_v54 }
 0x278   :  { %5171 = vpow2.f32 %v851_v20 }
 0x279   :  { %5173 = vpow2.f32 %v849_v21 }
 0x27b   :  { %v831_v62 = vpop.xlane.xlu0 %830  ;;  %v828_v60 = vpop.xlane.xlu1 %827 }
 0x27c   :  { %v841_v22 = vsub.f32 %v759_v30, %v831_v62  ;;  %v840_v26 = vsub.f32 %v713_v27, %v828_v60 }
 0x27d   :  { %v5621_v34 = vpop.eup %5167 }
 0x27e   :  { %v5623_v36 = vpop.eup %5169  ;;  %v855_v12 = vmul.f32 1.442695, %v841_v22  ;;  %v853_v10 = vmul.f32 1.442695, %v840_v26  ;;  %v865_v37 = vsel %vm442_vm1, %v5621_v34, 0.0 }
 0x27f   :  { %866 = vadd.xlane.f32.xlu0 %v865_v37  ;;  %v862_v38 = vsel %vm442_vm1, %v5623_v36, 0.0 }
 0x280   :  { %5175 = vpow2.f32 %v855_v12  ;;  %863 = vadd.xlane.f32.xlu1 %v862_v38  ;;  %v399_v12 = vadd.f32 %v5605_v58, %v5575_v32  ;;  %v5726_v32 = vpack.c.bf16 %v5590_v33, %v5590_v33 }
 0x281   :  { %5177 = vpow2.f32 %v853_v10 }
 0x282   :  { %v5730_v37 = vpack.c.bf16 %v399_v12, %v399_v12 }
 0x283   :  { %v834_v55 = vpop.xlane.xlu1 %833 }
 0x284   :  { %v842_v56 = vsub.f32 %v5613_v47, %v834_v55  ;;  %v1142_v33 = vsel %vm910_vm2, %v5730_v37, 0 }
 0x285   :  { %v5629_v40 = vpop.eup %5171 }
 0x286   :  { %v5631_v30 = vpop.eup %5173  ;;  %v871_v27 = vsel %vm442_vm1, %v5629_v40, 0.0  ;;  %v857_v57 = vmul.f32 1.442695, %v842_v56  ;;  %v5748_v56 = vpack.c.bf16 %v5596_v49, %v5596_v49 }
 0x287   :  { %872 = vadd.xlane.f32.xlu0 %v871_v27  ;;  %v868_v42 = vsel %vm442_vm1, %v5631_v30, 0.0 }
 0x288   :  { %869 = vadd.xlane.f32.xlu1 %v868_v42  ;;  %5179 = vpow2.f32 %v857_v57 }
 0x28d   :  { %v5637_v43 = vpop.eup %5175 }
 0x28e   :  { %v5639_v45 = vpop.eup %5177  ;;  %v877_v50 = vsel %vm442_vm1, %v5637_v43, 0.0 }
 0x28f   :  { %878 = vadd.xlane.f32.xlu0 %v877_v50  ;;  %v874_v53 = vsel %vm442_vm1, %v5639_v45, 0.0  ;;  %v1188_v50 = vsel %vm910_vm2, %v5726_v32, 0 }
 0x290   :  { %875 = vadd.xlane.f32.xlu1 %v874_v53 }
 0x295   :  { %v5666_v59 = vpop.eup %5179 }
 0x296   :  { %v880_v47 = vsel %vm442_vm1, %v5666_v59, 0.0 }
 0x2a1   :  { %1373 = vrot.lane.b32.xlu1 %v5477_v48, %s5389_s2 }
 0x2a5   :  { %1318 = vrot.lane.b32.xlu1 %v5480_v51, %s5389_s2  ;;  %1321 = vrot.lane.b32.xlu0 %v5470_v41, %s5389_s2 }
 0x2a9   :  { %1425 = vrot.lane.b32.xlu0 %v5482_v52, %s5389_s2 }
 0x2ad   :  { %1422 = vrot.lane.b32.xlu0 %v5502_v1, %s5389_s2 }
 0x2b1   :  { %1529 = vrot.lane.b32.xlu0 %v5504_v2, %s5389_s2 }
 0x2b5   :  { %1526 = vrot.lane.b32.xlu0 %v5528_v15, %s5389_s2 }
 0x2b9   :  { %1633 = vrot.lane.b32.xlu0 %v5530_v16, %s5389_s2 }
 0x2bd   :  { %1630 = vrot.lane.b32.xlu0 %v5551_v24, %s5389_s2 }
 0x2c1   :  { %1830 = vrot.lane.b32.xlu0 %v5585_v44, %s5389_s2 }
 0x2c9   :  { %881 = vadd.xlane.f32.xlu1 %v880_v47 }
 0x2da   :  { %1370 = vrot.lane.b32.xlu1 %v5500_v0, %s5389_s2 }
 0x2de   :  { %1477 = vrot.lane.b32.xlu1 %v5497_v61, %s5389_s2 }
 0x2e2   :  { %1474 = vrot.lane.b32.xlu1 %v5526_v14, %s5389_s2 }
 0x2e6   :  { %1581 = vrot.lane.b32.xlu1 %v5523_v11, %s5389_s2 }
 0x2ea   :  { %1578 = vrot.lane.b32.xlu1 %v5553_v25, %s5389_s2 }
 0x2ee   :  { %1685 = vrot.lane.b32.xlu1 %v5543_v23, %s5389_s2 }
 0x2f2   :  { %1682 = vrot.lane.b32.xlu1 %v5567_v28, %s5389_s2 }
 0x2f6   :  { %1879 = vrot.lane.b32.xlu1 %v5587_v31, %s5389_s2 }
 0x2fa   :  { %1928 = vrot.lane.b32.xlu1 %v5688_v63, %s5389_s2 }
 0x2fe   :  { %1977 = vrot.lane.b32.xlu1 %v5694_v3, %s5389_s2 }
 0x300   :  { %v861_v4 = vpop.xlane.xlu0 %860 }
 0x301   :  { %5181 = vrcp.f32 %v861_v4 }
 0x308   :  { %v867_v5 = vpop.xlane.xlu0 %866 }
 0x309   :  { %5183 = vrcp.f32 %v867_v5  ;;  %v864_v6 = vpop.xlane.xlu1 %863 }
 0x30a   :  { %5185 = vrcp.f32 %v864_v6 }
 0x30e   :  { %v5182_v7 = vpop.eup %5181 }
 0x30f   :  { %v891_v35 = vmul.f32 %v5182_v7, %v5617_v19  ;;  %v5707_v19 = vpack.c.bf16 %v5593_v46, %v5593_v46  ;;  %v1050_v46 = vsel %vm910_vm2, %v5694_v3, 0 }
 0x310   :  { %v873_v8 = vpop.xlane.xlu0 %872 }
 0x311   :  { %5187 = vrcp.f32 %v873_v8  ;;  %v870_v9 = vpop.xlane.xlu1 %869  ;;  %v899_v13 = vpack.c.bf16 %v891_v35, %v891_v35  ;;  %v1096_v26 = vsel %vm910_vm2, %v5707_v19, 0  ;;  %v1234_v35 = vsel %vm910_vm2, %v5748_v56, 0 }
 0x312   :  { %5189 = vrcp.f32 %v870_v9 }
 0x313   :  { %4742 = vmatmul.mubr.msk.bf16.vlgmr.msra.gmra.mxu0 %vm442_vm1, %v899_v13 }
 0x314   :  { %4752 = vmatpush3.bf16.msra.mxu0 %v1004_v39  ;;  %4753 = vmatprep.mubr.msk.bf16.mxu0 %vm5388_vm0, %v5387_v29 }
 0x315   :  { %4763 = vmatprep.subr.bf16.mxu0 %v5387_v29 }
 0x316   :  { %v5184_v17 = vpop.eup %5183 }
 0x317   :  { %v5186_v18 = vpop.eup %5185  ;;  %v893_v20 = vmul.f32 %v5184_v17, %v5621_v34 }
 0x318   :  { %v879_v21 = vpop.xlane.xlu0 %878  ;;  %v892_v54 = vmul.f32 %v5186_v18, %v5623_v36 }
 0x319   :  { %5191 = vrcp.f32 %v879_v21  ;;  %v876_v62 = vpop.xlane.xlu1 %875  ;;  %v901_v60 = vpack.c.bf16 %v893_v20, %v893_v20 }
 0x31a   :  { %5193 = vrcp.f32 %v876_v62  ;;  %v900_v22 = vpack.c.bf16 %v892_v54, %v892_v54 }
 0x31b   :  { %4754 = vmatmul.mubr.msk.bf16.vlgmr.msra.gmra.mxu0 %vm442_vm1, %v901_v60 }
 0x31c   :  { %4748 = vmatmul.mubr.msk.bf16.vlgmr.msra.gmra.mxu1 %vm442_vm1, %v900_v22  ;;  %4764 = vmatpush3.bf16.msra.mxu0 %v1096_v26  ;;  %v1322_v36 = vpop.permute.xlu0 %1321 }
 0x31d   :  { %4758 = vmatpush3.bf16.msra.mxu1 %v1050_v46  ;;  %4759 = vmatprep.mubr.msk.bf16.mxu1 %vm5388_vm0, %v5387_v29  ;;  %v1327_v6 = vsel %vm442_vm1, %v1322_v36, 0  ;;  %v1374_v7 = vpop.permute.xlu1 %1373 }
 0x31e   :  { %v5188_v34 = vpop.eup %5187  ;;  %4765 = vmatprep.mubr.msk.bf16.mxu0 %vm5388_vm0, %v5387_v29  ;;  %4769 = vmatprep.subr.bf16.mxu1 %v5387_v29  ;;  %v1379_v46 = vsel %vm442_vm1, %v1374_v7, 0 }
 0x31f   :  { %v5190_v10 = vpop.eup %5189  ;;  %4775 = vmatprep.subr.bf16.mxu0 %v5387_v29  ;;  %v895_v58 = vmul.f32 %v5188_v34, %v5629_v40 }
 0x320   :  { %v894_v38 = vmul.f32 %v5190_v10, %v5631_v30  ;;  %v1426_v53 = vpop.permute.xlu0 %1425 }
 0x321   :  { %v903_v27 = vpack.c.bf16 %v895_v58, %v895_v58 }
 0x322   :  { %v902_v42 = vpack.c.bf16 %v894_v38, %v894_v38 }
 0x323   :  { %4766 = vmatmul.mubr.msk.bf16.vlgmr.msra.gmra.mxu0 %vm442_vm1, %v903_v27 }
 0x324   :  { %4760 = vmatmul.mubr.msk.bf16.vlgmr.msra.gmra.mxu1 %vm442_vm1, %v902_v42  ;;  %4776 = vmatpush3.bf16.msra.mxu0 %v1188_v50  ;;  %v1423_v4 = vpop.permute.xlu0 %1422 }
 0x325   :  { %4770 = vmatpush3.bf16.msra.mxu1 %v1142_v33  ;;  %4771 = vmatprep.mubr.msk.bf16.mxu1 %vm5388_vm0, %v5387_v29 }
 0x326   :  { %v5192_v40 = vpop.eup %5191  ;;  %4777 = vmatprep.mubr.msk.bf16.mxu0 %vm5388_vm0, %v5387_v29  ;;  %4781 = vmatprep.subr.bf16.mxu1 %v5387_v29 }
 0x327   :  { %v5194_v30 = vpop.eup %5193  ;;  %4787 = vmatprep.subr.bf16.mxu0 %v5387_v29  ;;  %v897_v55 = vmul.f32 %v5192_v40, %v5637_v43  ;;  %v1319_v43 = vpop.permute.xlu1 %1318 }
 0x328   :  { %v896_v57 = vmul.f32 %v5194_v30, %v5639_v45  ;;  %v1530_v49 = vpop.permute.xlu0 %1529  ;;  %v1431_v45 = vsel %vm442_vm1, %v1426_v53, 0 }
 0x329   :  { %v905_v47 = vpack.c.bf16 %v897_v55, %v897_v55  ;;  %v1535_v9 = vsel %vm442_vm1, %v1530_v49, 0 }
 0x32a   :  { %v904_v5 = vpack.c.bf16 %v896_v57, %v896_v57 }
 0x32b   :  { %4778 = vmatmul.mubr.msk.bf16.vlgmr.msra.gmra.mxu0 %vm442_vm1, %v905_v47 }
 0x32c   :  { %4772 = vmatmul.mubr.msk.bf16.vlgmr.msra.gmra.mxu1 %vm442_vm1, %v904_v5  ;;  %4788 = vmatpush3.bf16.xpose.msra.mxu0 %v1327_v6  ;;  %v1527_v8 = vpop.permute.xlu0 %1526 }
 0x32d   :  { %4782 = vmatpush3.bf16.msra.mxu1 %v1234_v35  ;;  %4789 = vmatprep.mubr.msk.bf16.mxu0 %vm5388_vm0, %v5387_v29 }
 0x32e   :  { %4799 = vmatprep.subr.bf16.mxu0 %v5387_v29  ;;  %4783 = vmatprep.mubr.msk.bf16.mxu1 %vm5388_vm0, %v5387_v29 }
 0x32f   :  { %4793 = vmatprep.subr.bf16.mxu1 %v5387_v29 }
 0x330   :  { %v1634_v13 = vpop.permute.xlu0 %1633 }
 0x331   :  { %v1639_v17 = vsel %vm442_vm1, %v1634_v13, 0 }
 0x333   :  { %4790 = vmatmul.mubr.msk.bf16.vlgmr.msra.gmra.mxu0 %vm442_vm1, %v1319_v43 }
 0x334   :  { %4800 = vmatpush3.bf16.xpose.msra.mxu0 %v1431_v45  ;;  %4801 = vmatprep.mubr.msk.bf16.mxu0 %vm5388_vm0, %v5387_v29  ;;  %v1631_v39 = vpop.permute.xlu0 %1630 }
 0x335   :  { %4811 = vmatprep.subr.bf16.mxu0 %v5387_v29 }
 0x338   :  { %v1831_v18 = vpop.permute.xlu0 %1830 }
 0x339   :  { %v1836_v20 = vsel %vm910_vm2, %v1831_v18, 0 }
 0x33b   :  { %4802 = vmatmul.mubr.msk.bf16.vlgmr.msra.gmra.mxu0 %vm442_vm1, %v1423_v4 }
 0x33c   :  { %4812 = vmatpush3.bf16.xpose.msra.mxu0 %v1535_v9  ;;  %4813 = vmatprep.mubr.msk.bf16.mxu0 %vm5388_vm0, %v5387_v29 }
 0x33d   :  { %4823 = vmatprep.subr.bf16.mxu0 %v5387_v29 }
 0x343   :  { %4814 = vmatmul.mubr.msk.bf16.vlgmr.msra.gmra.mxu0 %vm442_vm1, %v1527_v8 }
 0x344   :  { %4824 = vmatpush3.bf16.xpose.msra.mxu0 %v1639_v17  ;;  %4825 = vmatprep.mubr.msk.bf16.mxu0 %vm5388_vm0, %v5387_v29 }
 0x345   :  { %4835 = vmatprep.subr.bf16.mxu0 %v5387_v29 }
 0x34b   :  { %4826 = vmatmul.mubr.msk.bf16.vlgmr.msra.gmra.mxu0 %vm442_vm1, %v1631_v39 }
 0x34c   :  { %4836 = vmatpush3.bf16.msra.mxu0 %v1836_v20  ;;  %4837 = vmatprep.mubr.msk.bf16.mxu0 %vm5388_vm0, %v5387_v29 }
 0x34d   :  { %4847 = vmatprep.subr.bf16.mxu0 %v5387_v29 }
 0x352   :  { %v882_v21 = vpop.xlane.xlu1 %881 }
 0x353   :  { %5195 = vrcp.f32 %v882_v21 }
 0x356   :  { %v1371_v54 = vpop.permute.xlu1 %1370 }
 0x35a   :  { %v1478_v62 = vpop.permute.xlu1 %1477 }
 0x35b   :  { %v1483_v36 = vsel %vm442_vm1, %v1478_v62, 0 }
 0x35e   :  { %v1475_v12 = vpop.permute.xlu1 %1474 }
 0x360   :  { %v5196_v60 = vpop.eup %5195 }
 0x361   :  { %v898_v22 = vmul.f32 %v5196_v60, %v5666_v59 }
 0x362   :  { %v1582_v34 = vpop.permute.xlu1 %1581 }
 0x363   :  { %v906_v26 = vpack.c.bf16 %v898_v22, %v898_v22  ;;  %v1587_v10 = vsel %vm442_vm1, %v1582_v34, 0 }
 0x365   :  { %4784 = vmatmul.mubr.msk.bf16.vlgmr.msra.gmra.mxu1 %vm442_vm1, %v906_v26 }
 0x366   :  { %4794 = vmatpush3.bf16.xpose.msra.mxu1 %v1379_v46  ;;  %4795 = vmatprep.mubr.msk.bf16.mxu1 %vm5388_vm0, %v5387_v29  ;;  %v1579_v59 = vpop.permute.xlu1 %1578 }
 0x367   :  { %4805 = vmatprep.subr.bf16.mxu1 %v5387_v29 }
 0x36a   :  { %v1686_v58 = vpop.permute.xlu1 %1685 }
 0x36b   :  { %v1691_v27 = vsel %vm442_vm1, %v1686_v58, 0 }
 0x36d   :  { %4796 = vmatmul.mubr.msk.bf16.vlgmr.msra.gmra.mxu1 %vm442_vm1, %v1371_v54 }
 0x36e   :  { %4806 = vmatpush3.bf16.xpose.msra.mxu1 %v1483_v36  ;;  %4807 = vmatprep.mubr.msk.bf16.mxu1 %vm5388_vm0, %v5387_v29  ;;  %v1683_v38 = vpop.permute.xlu1 %1682 }
 0x36f   :  { %4817 = vmatprep.subr.bf16.mxu1 %v5387_v29 }
 0x372   :  { %v1880_v42 = vpop.permute.xlu1 %1879 }
 0x373   :  { %v1885_v50 = vsel %vm910_vm2, %v1880_v42, 0 }
 0x375   :  { %4808 = vmatmul.mubr.msk.bf16.vlgmr.msra.gmra.mxu1 %vm442_vm1, %v1475_v12 }
 0x376   :  { %4818 = vmatpush3.bf16.xpose.msra.mxu1 %v1587_v10  ;;  %4819 = vmatprep.mubr.msk.bf16.mxu1 %vm5388_vm0, %v5387_v29 }
 0x377   :  { %4829 = vmatprep.subr.bf16.mxu1 %v5387_v29 }
 0x37d   :  { %4820 = vmatmul.mubr.msk.bf16.vlgmr.msra.gmra.mxu1 %vm442_vm1, %v1579_v59 }
 0x37e   :  { %4830 = vmatpush3.bf16.xpose.msra.mxu1 %v1691_v27  ;;  %4831 = vmatprep.mubr.msk.bf16.mxu1 %vm5388_vm0, %v5387_v29 }
 0x37f   :  { %4841 = vmatprep.subr.bf16.mxu1 %v5387_v29 }
 0x385   :  { %4832 = vmatmul.mubr.msk.bf16.vlgmr.msra.gmra.mxu1 %vm442_vm1, %v1683_v38 }
 0x386   :  { %4842 = vmatpush3.bf16.msra.mxu1 %v1885_v50  ;;  %4843 = vmatprep.mubr.msk.bf16.mxu1 %vm5388_vm0, %v5387_v29 }
 0x387   :  { %4853 = vmatprep.subr.bf16.mxu1 %v5387_v29 }
 0x3d3   :  { %v948_v53 = vpop.f32.mrf.mxu0 }
 0x3d4   :  { %v4483_v33 = vpack.c.bf16 %v948_v53, %v948_v53 }
 0x3d5   :  { %v4743_v40 = vpop.f32.mrf.mxu0 }
 0x3d6   :  { %1309 = vst.msk [vmem:[#allocation2] sm:$0xf] %vm1308_vm3, %v4483_v33 }
 0x3d7   :  { %v951_v30 = vpop.f32.mrf.mxu0 }
 0x3d9   :  { %v4744_v55 = vpop.f32.mrf.mxu0 }
 0x3db   :  { %v1040_v57 = vpop.f32.mrf.mxu0 }
 0x3dc   :  { %v994_v47 = vpop.f32.mrf.mxu1  ;;  %v4485_v4 = vpack.c.bf16 %v1040_v57, %v1040_v57 }
 0x3dd   :  { %v4484_v5 = vpack.c.bf16 %v994_v47, %v994_v47  ;;  %v4755_v6 = vpop.f32.mrf.mxu0 }
 0x3de   :  { %v4749_v7 = vpop.f32.mrf.mxu1  ;;  %1311 = vst.msk [vmem:[#allocation2 + $0x8] sm:$0xf] %vm1308_vm3, %v4485_v4 }
 0x3df   :  { %v1043_v35 = vpop.f32.mrf.mxu0  ;;  %1310 = vst.msk [vmem:[#allocation2 + $0x4] sm:$0xf] %vm1308_vm3, %v4484_v5 }
 0x3e0   :  { %v997_v49 = vpop.f32.mrf.mxu1 }
 0x3e1   :  { %v4756_v43 = vpop.f32.mrf.mxu0 }
 0x3e2   :  { %v4750_v45 = vpop.f32.mrf.mxu1 }
 0x3e3   :  { %v1132_v8 = vpop.f32.mrf.mxu0 }
 0x3e4   :  { %v1086_v9 = vpop.f32.mrf.mxu1  ;;  %v4487_v13 = vpack.c.bf16 %v1132_v8, %v1132_v8 }
 0x3e5   :  { %v4486_v39 = vpack.c.bf16 %v1086_v9, %v1086_v9  ;;  %v4767_v17 = vpop.f32.mrf.mxu0 }
 0x3e6   :  { %v4761_v18 = vpop.f32.mrf.mxu1  ;;  %1313 = vst.msk [vmem:[#allocation2 + $0x10] sm:$0xf] %vm1308_vm3, %v4487_v13 }
 0x3e7   :  { %v1135_v20 = vpop.f32.mrf.mxu0  ;;  %1312 = vst.msk [vmem:[#allocation2 + $0xc] sm:$0xf] %vm1308_vm3, %v4486_v39 }
 0x3e8   :  { %v1089_v21 = vpop.f32.mrf.mxu1 }
 0x3e9   :  { %v4768_v54 = vpop.f32.mrf.mxu0 }
 0x3ea   :  { %v4762_v62 = vpop.f32.mrf.mxu1 }
 0x3eb   :  { %v1224_v60 = vpop.f32.mrf.mxu0 }
 0x3ec   :  { %v1178_v22 = vpop.f32.mrf.mxu1  ;;  %v4489_v26 = vpack.c.bf16 %v1224_v60, %v1224_v60 }
 0x3ed   :  { %v4488_v12 = vpack.c.bf16 %v1178_v22, %v1178_v22  ;;  %v4779_v46 = vpop.f32.mrf.mxu0 }
 0x3ee   :  { %v4773_v34 = vpop.f32.mrf.mxu1  ;;  %1315 = vst.msk [vmem:[#allocation2 + $0x18] sm:$0xf] %vm1308_vm3, %v4489_v26 }
 0x3ef   :  { %v1227_v36 = vpop.f32.mrf.mxu0  ;;  %1314 = vst.msk [vmem:[#allocation2 + $0x14] sm:$0xf] %vm1308_vm3, %v4488_v12 }
 0x3f0   :  { %v1181_v59 = vpop.f32.mrf.mxu1 }
 0x3f1   :  { %v4780_v10 = vpop.f32.mrf.mxu0 }
 0x3f2   :  { %v4774_v58 = vpop.f32.mrf.mxu1 }
 0x3f3   :  { %v1363_v38 = vpop.f32.mrf.mxu0 }
 0x3f4   :  { %v1733_v27 = vsel %vm442_vm1, %v1363_v38, -inf }
 0x3f5   :  { %1734 = vmax.xlane.f32.xlu0 %v1733_v27  ;;  %v4791_v42 = vpop.f32.mrf.mxu0 }
 0x3f7   :  { %v1366_v50 = vpop.f32.mrf.mxu0 }
 0x3f9   :  { %v4792_v53 = vpop.f32.mrf.mxu0 }
 0x3fb   :  { %v1467_v33 = vpop.f32.mrf.mxu0 }
 0x3fc   :  { %v1739_v40 = vsel %vm442_vm1, %v1467_v33, -inf }
 0x3fd   :  { %1740 = vmax.xlane.f32.xlu0 %v1739_v40  ;;  %v4803_v30 = vpop.f32.mrf.mxu0 }
 0x3ff   :  { %v1470_v55 = vpop.f32.mrf.mxu0 }
 0x401   :  { %v4804_v57 = vpop.f32.mrf.mxu0 }
 0x403   :  { %v5817_v47 = vpop.f32.mrf.mxu0 }
 0x404   :  { %v1745_v12 = vsel %vm442_vm1, %v5817_v47, -inf }
 0x405   :  { %v4815_v4 = vpop.f32.mrf.mxu0 }
 0x407   :  { %v1574_v5 = vpop.f32.mrf.mxu0 }
 0x409   :  { %v4816_v6 = vpop.f32.mrf.mxu0 }
 0x40b   :  { %v5819_v7 = vpop.f32.mrf.mxu0 }
 0x40c   :  { %v1751_v36 = vsel %vm442_vm1, %v5819_v7, -inf }
 0x40d   :  { %v4827_v35 = vpop.f32.mrf.mxu0 }
 0x40f   :  { %v1678_v49 = vpop.f32.mrf.mxu0 }
 0x411   :  { %v4828_v43 = vpop.f32.mrf.mxu0 }
 0x425   :  { %v1270_v45 = vpop.f32.mrf.mxu1 }
 0x426   :  { %v4490_v8 = vpack.c.bf16 %v1270_v45, %v1270_v45 }
 0x427   :  { %v4785_v9 = vpop.f32.mrf.mxu1 }
 0x428   :  { %1316 = vst.msk [vmem:[#allocation2 + $0x1c] sm:$0xf] %vm1308_vm3, %v4490_v8  ;;  %v1929_v9 = vpop.permute.xlu1 %1928 }
 0x429   :  { %v1273_v13 = vpop.f32.mrf.mxu1 }
 0x42b   :  { %v4786_v39 = vpop.f32.mrf.mxu1 }
 0x42c   :  { %v5842_v13 = vpop.permute.xlu1 %1977 }
 0x42d   :  { %v1415_v17 = vpop.f32.mrf.mxu1 }
 0x42e   :  { %v1736_v18 = vsel %vm442_vm1, %v1415_v17, -inf }
 0x42f   :  { %1737 = vmax.xlane.f32.xlu1 %v1736_v18  ;;  %v4797_v20 = vpop.f32.mrf.mxu1 }
 0x431   :  { %v1418_v21 = vpop.f32.mrf.mxu1 }
 0x433   :  { %v4798_v54 = vpop.f32.mrf.mxu1 }
 0x435   :  { %v1519_v62 = vpop.f32.mrf.mxu1 }
 0x436   :  { %v1742_v60 = vsel %vm442_vm1, %v1519_v62, -inf }
 0x437   :  { %1743 = vmax.xlane.f32.xlu0 %v1742_v60  ;;  %v4809_v22 = vpop.f32.mrf.mxu1 }
 0x439   :  { %v1522_v26 = vpop.f32.mrf.mxu1 }
 0x43b   :  { %1746 = vmax.xlane.f32.xlu0 %v1745_v12  ;;  %v4810_v46 = vpop.f32.mrf.mxu1 }
 0x43d   :  { %v1623_v34 = vpop.f32.mrf.mxu1 }
 0x43e   :  { %v1748_v59 = vsel %vm442_vm1, %v1623_v34, -inf }
 0x43f   :  { %1752 = vmax.xlane.f32.xlu0 %v1751_v36  ;;  %1749 = vmax.xlane.f32.xlu1 %v1748_v59  ;;  %v4821_v10 = vpop.f32.mrf.mxu1 }
 0x441   :  { %v1626_v58 = vpop.f32.mrf.mxu1 }
 0x443   :  { %v4822_v27 = vpop.f32.mrf.mxu1 }
 0x445   :  { %v5829_v42 = vpop.f32.mrf.mxu1 }
 0x446   :  { %v1754_v30 = vsel %vm442_vm1, %v5829_v42, -inf }
 0x447   :  { %v4833_v50 = vpop.f32.mrf.mxu1 }
 0x449   :  { %v1730_v53 = vpop.f32.mrf.mxu1 }
 0x44b   :  { %v4834_v40 = vpop.f32.mrf.mxu1 }
 0x450   :  { %2075 = vrot.lane.b32.xlu1 %v5730_v37, %s5389_s2 }
 0x455   :  { %2026 = vrot.lane.b32.xlu0 %v5707_v19, %s5389_s2 }
 0x474   :  { %1755 = vmax.xlane.f32.xlu1 %v1754_v30 }
 0x47e   :  { %v1735_v55 = vpop.xlane.xlu0 %1734 }
 0x47f   :  { %v1757_v57 = vsub.f32 %v1363_v38, %v1735_v55 }
 0x481   :  { %v1765_v4 = vmul.f32 1.442695, %v1757_v57 }
 0x483   :  { %5197 = vpow2.f32 %v1765_v4 }
 0x486   :  { %v1741_v5 = vpop.xlane.xlu0 %1740 }
 0x487   :  { %v1759_v6 = vsub.f32 %v1467_v33, %v1741_v5 }
 0x489   :  { %v1769_v35 = vmul.f32 1.442695, %v1759_v6 }
 0x48b   :  { %5199 = vpow2.f32 %v1769_v35 }
 0x490   :  { %v5198_v49 = vpop.eup %5197 }
 0x491   :  { %v1781_v43 = vsel %vm442_vm1, %v5198_v49, 0.0 }
 0x492   :  { %1782 = vadd.xlane.f32.xlu0 %v1781_v43 }
 0x498   :  { %v5838_v45 = vpop.eup %5199 }
 0x499   :  { %v1787_v8 = vsel %vm442_vm1, %v5838_v45, 0.0 }
 0x49a   :  { %1788 = vadd.xlane.f32.xlu0 %v1787_v8 }
 0x4b8   :  { %v1738_v38 = vpop.xlane.xlu1 %1737 }
 0x4b9   :  { %v1758_v39 = vsub.f32 %v1415_v17, %v1738_v38 }
 0x4bb   :  { %v1767_v18 = vmul.f32 1.442695, %v1758_v39  ;;  %v1934_v39 = vsel %vm910_vm2, %v1929_v9, 0 }
 0x4bd   :  { %5201 = vpow2.f32 %v1767_v18 }
 0x4c0   :  { %v1744_v33 = vpop.xlane.xlu0 %1743 }
 0x4c1   :  { %v1760_v20 = vsub.f32 %v1519_v62, %v1744_v33 }
 0x4c3   :  { %v1771_v21 = vmul.f32 1.442695, %v1760_v20 }
 0x4c4   :  { %v1747_v54 = vpop.xlane.xlu0 %1746 }
 0x4c5   :  { %5203 = vpow2.f32 %v1771_v21  ;;  %v1761_v60 = vsub.f32 %v5817_v47, %v1747_v54 }
 0x4c7   :  { %v1773_v22 = vmul.f32 1.442695, %v1761_v60 }
 0x4c8   :  { %v1750_v47 = vpop.xlane.xlu1 %1749  ;;  %v1753_v10 = vpop.xlane.xlu0 %1752 }
 0x4c9   :  { %5205 = vpow2.f32 %v1773_v22  ;;  %v1762_v59 = vsub.f32 %v1623_v34, %v1750_v47  ;;  %v1763_v58 = vsub.f32 %v5819_v7, %v1753_v10 }
 0x4ca   :  { %v5845_v26 = vpop.eup %5201 }
 0x4cb   :  { %v1784_v12 = vsel %vm442_vm1, %v5845_v26, 0.0  ;;  %v1775_v27 = vmul.f32 1.442695, %v1762_v59  ;;  %v1777_v50 = vmul.f32 1.442695, %v1763_v58 }
 0x4cc   :  { %1785 = vadd.xlane.f32.xlu1 %v1784_v12  ;;  %v2027_v34 = vpop.permute.xlu0 %2026  ;;  %v2076_v57 = vpop.permute.xlu1 %2075 }
 0x4cd   :  { %5207 = vpow2.f32 %v1775_v27  ;;  %v2032_v9 = vsel %vm910_vm2, %v2027_v34, 0 }
 0x4ce   :  { %5209 = vpow2.f32 %v1777_v50 }
 0x4d2   :  { %v5849_v46 = vpop.eup %5203 }
 0x4d3   :  { %v1790_v17 = vsel %vm442_vm1, %v5849_v46, 0.0 }
 0x4d4   :  { %1791 = vadd.xlane.f32.xlu1 %v1790_v17  ;;  %v1983_v17 = vsel %vm910_vm2, %v5842_v13, 0  ;;  %v2081_v13 = vsel %vm910_vm2, %v2076_v57, 0 }
 0x4d6   :  { %v5853_v62 = vpop.eup %5205 }
 0x4d7   :  { %v1793_v36 = vsel %vm442_vm1, %v5853_v62, 0.0 }
 0x4d8   :  { %1794 = vadd.xlane.f32.xlu0 %v1793_v36 }
 0x4da   :  { %v5862_v53 = vpop.eup %5207 }
 0x4db   :  { %v1796_v40 = vsel %vm442_vm1, %v5862_v53, 0.0  ;;  %v5866_v30 = vpop.eup %5209 }
 0x4dc   :  { %v1799_v55 = vsel %vm442_vm1, %v5866_v30, 0.0 }
 0x4e5   :  { %2173 = vrot.lane.b32.xlu1 %v5748_v56, %s5389_s2 }
 0x4ee   :  { %2124 = vrot.lane.b32.xlu0 %v5726_v32, %s5389_s2 }
 0x4fd   :  { %v1756_v4 = vpop.xlane.xlu1 %1755 }
 0x4fe   :  { %v1764_v6 = vsub.f32 %v5829_v42, %v1756_v4 }
 0x500   :  { %v1779_v43 = vmul.f32 1.442695, %v1764_v6 }
 0x509   :  { %1797 = vadd.xlane.f32.xlu1 %v1796_v40 }
 0x50d   :  { %1800 = vadd.xlane.f32.xlu0 %v1799_v55 }
 0x51a   :  { %2330 = vrot.lane.b32.xlu1 %v5477_v48, %s5390_s11 }
 0x51b   :  { %v1783_v7 = vpop.xlane.xlu0 %1782 }
 0x51c   :  { %5211 = vrcp.f32 %v1783_v7 }
 0x523   :  { %2280 = vrot.lane.b32.xlu0 %v5470_v41, %s5390_s11  ;;  %v1789_v5 = vpop.xlane.xlu0 %1788 }
 0x524   :  { %5213 = vrcp.f32 %v1789_v5 }
 0x525   :  { %5215 = vpow2.f32 %v1779_v43 }
 0x527   :  { %2278 = vrot.lane.b32.xlu0 %v5480_v51, %s5390_s11 }
 0x529   :  { %v5212_v35 = vpop.eup %5211 }
 0x52a   :  { %v1813_v8 = vmul.f32 %v5212_v35, %v5198_v49 }
 0x52b   :  { %2380 = vrot.lane.b32.xlu0 %v5482_v52, %s5390_s11 }
 0x52c   :  { %v1821_v38 = vpack.c.bf16 %v1813_v8, %v1813_v8 }
 0x52e   :  { %4838 = vmatmul.mubr.msk.bf16.vlgmr.msra.gmra.mxu0 %vm442_vm1, %v1821_v38 }
 0x52f   :  { %2378 = vrot.lane.b32.xlu0 %v5502_v1, %s5390_s11  ;;  %4848 = vmatpush3.bf16.msra.mxu0 %v1934_v39 }
 0x530   :  { %4849 = vmatprep.mubr.msk.bf16.mxu0 %vm5388_vm0, %v5387_v29  ;;  %4859 = vmatprep.subr.bf16.mxu0 %v5387_v29 }
 0x531   :  { %v5214_v42 = vpop.eup %5213 }
 0x532   :  { %v1815_v49 = vmul.f32 %v5214_v42, %v5838_v45  ;;  %v5896_v33 = vpop.eup %5215 }
 0x533   :  { %2480 = vrot.lane.b32.xlu0 %v5504_v2, %s5390_s11  ;;  %v1802_v45 = vsel %vm442_vm1, %v5896_v33, 0.0 }
 0x534   :  { %v1823_v18 = vpack.c.bf16 %v1815_v49, %v1815_v49 }
 0x536   :  { %4850 = vmatmul.mubr.msk.bf16.vlgmr.msra.gmra.mxu0 %vm442_vm1, %v1823_v18 }
 0x537   :  { %2478 = vrot.lane.b32.xlu0 %v5528_v15, %s5390_s11  ;;  %4860 = vmatpush3.bf16.msra.mxu0 %v2032_v9 }
 0x538   :  { %4861 = vmatprep.mubr.msk.bf16.mxu0 %vm5388_vm0, %v5387_v29  ;;  %4871 = vmatprep.subr.bf16.mxu0 %v5387_v29 }
 0x53b   :  { %2580 = vrot.lane.b32.xlu0 %v5530_v16, %s5390_s11 }
 0x53e   :  { %1803 = vadd.xlane.f32.xlu1 %v1802_v45 }
 0x53f   :  { %2578 = vrot.lane.b32.xlu0 %v5551_v24, %s5390_s11 }
 0x543   :  { %2774 = vrot.lane.b32.xlu0 %v5585_v44, %s5390_s11 }
 0x54f   :  { %2328 = vrot.lane.b32.xlu1 %v5500_v0, %s5390_s11 }
 0x553   :  { %2430 = vrot.lane.b32.xlu1 %v5497_v61, %s5390_s11 }
 0x555   :  { %v1786_v20 = vpop.xlane.xlu1 %1785 }
 0x556   :  { %5217 = vrcp.f32 %v1786_v20 }
 0x557   :  { %2428 = vrot.lane.b32.xlu1 %v5526_v14, %s5390_s11 }
 0x55b   :  { %2530 = vrot.lane.b32.xlu1 %v5523_v11, %s5390_s11 }
 0x55d   :  { %v1792_v21 = vpop.xlane.xlu1 %1791 }
 0x55e   :  { %5219 = vrcp.f32 %v1792_v21 }
 0x55f   :  { %2528 = vrot.lane.b32.xlu1 %v5553_v25, %s5390_s11 }
 0x561   :  { %v1795_v54 = vpop.xlane.xlu0 %1794 }
 0x562   :  { %5221 = vrcp.f32 %v1795_v54 }
 0x563   :  { %v5218_v60 = vpop.eup %5217  ;;  %2630 = vrot.lane.b32.xlu1 %v5543_v23, %s5390_s11 }
 0x564   :  { %v1814_v22 = vmul.f32 %v5218_v60, %v5845_v26 }
 0x565   :  { %v2125_v58 = vpop.permute.xlu0 %2124 }
 0x566   :  { %v1822_v12 = vpack.c.bf16 %v1814_v22, %v1814_v22 }
 0x567   :  { %2628 = vrot.lane.b32.xlu1 %v5567_v28, %s5390_s11 }
 0x568   :  { %4844 = vmatmul.mubr.msk.bf16.vlgmr.msra.gmra.mxu1 %vm442_vm1, %v1822_v12 }
 0x569   :  { %4854 = vmatpush3.bf16.msra.mxu1 %v1983_v17  ;;  %4855 = vmatprep.mubr.msk.bf16.mxu1 %vm5388_vm0, %v5387_v29 }
 0x56a   :  { %4865 = vmatprep.subr.bf16.mxu1 %v5387_v29 }
 0x56b   :  { %v5220_v36 = vpop.eup %5219  ;;  %2822 = vrot.lane.b32.xlu1 %v5587_v31, %s5390_s11 }
 0x56c   :  { %v1816_v26 = vmul.f32 %v5220_v36, %v5849_v46  ;;  %v2130_v46 = vsel %vm910_vm2, %v2125_v58, 0 }
 0x56e   :  { %v1824_v47 = vpack.c.bf16 %v1816_v26, %v1816_v26 }
 0x56f   :  { %v5222_v59 = vpop.eup %5221  ;;  %2870 = vrot.lane.b32.xlu1 %v5688_v63, %s5390_s11 }
 0x570   :  { %4856 = vmatmul.mubr.msk.bf16.vlgmr.msra.gmra.mxu1 %vm442_vm1, %v1824_v47  ;;  %v1817_v10 = vmul.f32 %v5222_v59, %v5853_v62  ;;  %v2174_v62 = vpop.permute.xlu1 %2173 }
 0x571   :  { %4866 = vmatpush3.bf16.msra.mxu1 %v2081_v13  ;;  %4867 = vmatprep.mubr.msk.bf16.mxu1 %vm5388_vm0, %v5387_v29  ;;  %v2179_v35 = vsel %vm910_vm2, %v2174_v62, 0 }
 0x572   :  { %v1825_v27 = vpack.c.bf16 %v1817_v10, %v1817_v10  ;;  %4877 = vmatprep.subr.bf16.mxu1 %v5387_v29 }
 0x573   :  { %2918 = vrot.lane.b32.xlu1 %v5694_v3, %s5390_s11 }
 0x574   :  { %4862 = vmatmul.mubr.msk.bf16.vlgmr.msra.gmra.mxu0 %vm442_vm1, %v1825_v27 }
 0x575   :  { %4872 = vmatpush3.bf16.msra.mxu0 %v2130_v46  ;;  %4873 = vmatprep.mubr.msk.bf16.mxu0 %vm5388_vm0, %v5387_v29 }
 0x576   :  { %4883 = vmatprep.subr.bf16.mxu0 %v5387_v29 }
 0x592   :  { %v1798_v50 = vpop.xlane.xlu1 %1797 }
 0x593   :  { %5223 = vrcp.f32 %v1798_v50 }
 0x596   :  { %v1801_v40 = vpop.xlane.xlu0 %1800  ;;  %v2331_v20 = vpop.permute.xlu1 %2330 }
 0x597   :  { %5225 = vrcp.f32 %v1801_v40  ;;  %v2336_v59 = vsel %vm442_vm1, %v2331_v20, 0 }
 0x59a   :  { %v2281_v55 = vpop.permute.xlu0 %2280 }
 0x59b   :  { %v2286_v39 = vsel %vm442_vm1, %v2281_v55, 0 }
 0x59e   :  { %v2279_v34 = vpop.permute.xlu0 %2278 }
 0x5a0   :  { %v5224_v7 = vpop.eup %5223 }
 0x5a1   :  { %v1818_v57 = vmul.f32 %v5224_v7, %v5862_v53 }
 0x5a2   :  { %v2381_v4 = vpop.permute.xlu0 %2380 }
 0x5a3   :  { %v1826_v5 = vpack.c.bf16 %v1818_v57, %v1818_v57 }
 0x5a4   :  { %v5226_v6 = vpop.eup %5225 }
 0x5a5   :  { %4868 = vmatmul.mubr.msk.bf16.vlgmr.msra.gmra.mxu1 %vm442_vm1, %v1826_v5  ;;  %v1819_v43 = vmul.f32 %v5226_v6, %v5866_v30  ;;  %v2386_v30 = vsel %vm442_vm1, %v2381_v4, 0 }
 0x5a6   :  { %4878 = vmatpush3.bf16.msra.mxu1 %v2179_v35  ;;  %4879 = vmatprep.mubr.msk.bf16.mxu1 %vm5388_vm0, %v5387_v29  ;;  %v2379_v38 = vpop.permute.xlu0 %2378 }
 0x5a7   :  { %v1827_v8 = vpack.c.bf16 %v1819_v43, %v1819_v43  ;;  %4889 = vmatprep.subr.bf16.mxu1 %v5387_v29 }
 0x5a9   :  { %4874 = vmatmul.mubr.msk.bf16.vlgmr.msra.gmra.mxu0 %vm442_vm1, %v1827_v8 }
 0x5aa   :  { %4884 = vmatpush3.bf16.xpose.msra.mxu0 %v2286_v39  ;;  %4885 = vmatprep.mubr.msk.bf16.mxu0 %vm5388_vm0, %v5387_v29  ;;  %v2481_v53 = vpop.permute.xlu0 %2480 }
 0x5ab   :  { %4895 = vmatprep.subr.bf16.mxu0 %v5387_v29  ;;  %v2486_v49 = vsel %vm442_vm1, %v2481_v53, 0 }
 0x5ae   :  { %v2479_v42 = vpop.permute.xlu0 %2478 }
 0x5b1   :  { %4886 = vmatmul.mubr.msk.bf16.vlgmr.msra.gmra.mxu0 %vm442_vm1, %v2279_v34 }
 0x5b2   :  { %4896 = vmatpush3.bf16.xpose.msra.mxu0 %v2386_v30  ;;  %4897 = vmatprep.mubr.msk.bf16.mxu0 %vm5388_vm0, %v5387_v29  ;;  %v2581_v18 = vpop.permute.xlu0 %2580 }
 0x5b3   :  { %4907 = vmatprep.subr.bf16.mxu0 %v5387_v29  ;;  %v2586_v45 = vsel %vm442_vm1, %v2581_v18, 0 }
 0x5b6   :  { %v2579_v9 = vpop.permute.xlu0 %2578 }
 0x5b9   :  { %4898 = vmatmul.mubr.msk.bf16.vlgmr.msra.gmra.mxu0 %vm442_vm1, %v2379_v38 }
 0x5ba   :  { %4908 = vmatpush3.bf16.xpose.msra.mxu0 %v2486_v49  ;;  %4909 = vmatprep.mubr.msk.bf16.mxu0 %vm5388_vm0, %v5387_v29  ;;  %v2775_v21 = vpop.permute.xlu0 %2774 }
 0x5bb   :  { %4919 = vmatprep.subr.bf16.mxu0 %v5387_v29  ;;  %v2780_v60 = vsel %vm910_vm2, %v2775_v21, 0 }
 0x5c1   :  { %4910 = vmatmul.mubr.msk.bf16.vlgmr.msra.gmra.mxu0 %vm442_vm1, %v2479_v42 }
 0x5c2   :  { %4920 = vmatpush3.bf16.xpose.msra.mxu0 %v2586_v45  ;;  %4921 = vmatprep.mubr.msk.bf16.mxu0 %vm5388_vm0, %v5387_v29 }
 0x5c3   :  { %4931 = vmatprep.subr.bf16.mxu0 %v5387_v29 }
 0x5c7   :  { %v1804_v54 = vpop.xlane.xlu1 %1803 }
 0x5c8   :  { %5227 = vrcp.f32 %v1804_v54 }
 0x5c9   :  { %4922 = vmatmul.mubr.msk.bf16.vlgmr.msra.gmra.mxu0 %vm442_vm1, %v2579_v9 }
 0x5ca   :  { %4932 = vmatpush3.bf16.msra.mxu0 %v2780_v60  ;;  %4933 = vmatprep.mubr.msk.bf16.mxu0 %vm5388_vm0, %v5387_v29 }
 0x5cb   :  { %4943 = vmatprep.subr.bf16.mxu0 %v5387_v29  ;;  %v2329_v22 = vpop.permute.xlu1 %2328 }
 0x5cf   :  { %v2431_v12 = vpop.permute.xlu1 %2430 }
 0x5d0   :  { %v2436_v10 = vsel %vm442_vm1, %v2431_v12, 0 }
 0x5d3   :  { %v2429_v47 = vpop.permute.xlu1 %2428 }
 0x5d5   :  { %v5228_v17 = vpop.eup %5227 }
 0x5d6   :  { %v1820_v36 = vmul.f32 %v5228_v17, %v5896_v33 }
 0x5d7   :  { %v2531_v13 = vpop.permute.xlu1 %2530 }
 0x5d8   :  { %v1828_v26 = vpack.c.bf16 %v1820_v36, %v1820_v36  ;;  %v2536_v58 = vsel %vm442_vm1, %v2531_v13, 0 }
 0x5da   :  { %4880 = vmatmul.mubr.msk.bf16.vlgmr.msra.gmra.mxu1 %vm442_vm1, %v1828_v26 }
 0x5db   :  { %4890 = vmatpush3.bf16.xpose.msra.mxu1 %v2336_v59  ;;  %4891 = vmatprep.mubr.msk.bf16.mxu1 %vm5388_vm0, %v5387_v29  ;;  %v2529_v33 = vpop.permute.xlu1 %2528 }
 0x5dc   :  { %4901 = vmatprep.subr.bf16.mxu1 %v5387_v29 }
 0x5df   :  { %v2631_v27 = vpop.permute.xlu1 %2630 }
 0x5e0   :  { %v2636_v40 = vsel %vm442_vm1, %v2631_v27, 0 }
 0x5e2   :  { %4892 = vmatmul.mubr.msk.bf16.vlgmr.msra.gmra.mxu1 %vm442_vm1, %v2329_v22 }
 0x5e3   :  { %4902 = vmatpush3.bf16.xpose.msra.mxu1 %v2436_v10  ;;  %4903 = vmatprep.mubr.msk.bf16.mxu1 %vm5388_vm0, %v5387_v29  ;;  %v2629_v50 = vpop.permute.xlu1 %2628 }
 0x5e4   :  { %4913 = vmatprep.subr.bf16.mxu1 %v5387_v29 }
 0x5e7   :  { %v2823_v57 = vpop.permute.xlu1 %2822 }
 0x5e8   :  { %v2828_v5 = vsel %vm910_vm2, %v2823_v57, 0 }
 0x5ea   :  { %4904 = vmatmul.mubr.msk.bf16.vlgmr.msra.gmra.mxu1 %vm442_vm1, %v2429_v47 }
 0x5eb   :  { %4914 = vmatpush3.bf16.xpose.msra.mxu1 %v2536_v58  ;;  %4915 = vmatprep.mubr.msk.bf16.mxu1 %vm5388_vm0, %v5387_v29 }
 0x5ec   :  { %4925 = vmatprep.subr.bf16.mxu1 %v5387_v29 }
 0x5ee   :  { %v5993_v46 = vpop.f32.mrf.mxu0 }
 0x5f0   :  { %v4839_v62 = vpop.f32.mrf.mxu0 }
 0x5f2   :  { %4916 = vmatmul.mubr.msk.bf16.vlgmr.msra.gmra.mxu1 %vm442_vm1, %v2529_v33  ;;  %v1875_v55 = vpop.f32.mrf.mxu0 }
 0x5f3   :  { %4926 = vmatpush3.bf16.xpose.msra.mxu1 %v2636_v40  ;;  %4927 = vmatprep.mubr.msk.bf16.mxu1 %vm5388_vm0, %v5387_v29 }
 0x5f4   :  { %v4840_v34 = vpop.f32.mrf.mxu0  ;;  %4937 = vmatprep.subr.bf16.mxu1 %v5387_v29 }
 0x5f6   :  { %v6000_v7 = vpop.f32.mrf.mxu0 }
 0x5f8   :  { %v4851_v4 = vpop.f32.mrf.mxu0 }
 0x5fa   :  { %4928 = vmatmul.mubr.msk.bf16.vlgmr.msra.gmra.mxu1 %vm442_vm1, %v2629_v50  ;;  %v1973_v6 = vpop.f32.mrf.mxu0 }
 0x5fb   :  { %4938 = vmatpush3.bf16.msra.mxu1 %v2828_v5  ;;  %4939 = vmatprep.mubr.msk.bf16.mxu1 %vm5388_vm0, %v5387_v29 }
 0x5fc   :  { %v4852_v35 = vpop.f32.mrf.mxu0  ;;  %4949 = vmatprep.subr.bf16.mxu1 %v5387_v29 }
 0x628   :  { %v6007_v43 = vpop.f32.mrf.mxu1 }
 0x62a   :  { %v4845_v8 = vpop.f32.mrf.mxu1 }
 0x62c   :  { %v1924_v38 = vpop.f32.mrf.mxu1 }
 0x62e   :  { %v4846_v39 = vpop.f32.mrf.mxu1 }
 0x630   :  { %v6009_v53 = vpop.f32.mrf.mxu1 }
 0x632   :  { %v4857_v30 = vpop.f32.mrf.mxu1 }
 0x634   :  { %v2022_v42 = vpop.f32.mrf.mxu1  ;;  %v6011_v49 = vpop.f32.mrf.mxu0 }
 0x636   :  { %v4858_v18 = vpop.f32.mrf.mxu1  ;;  %v4863_v9 = vpop.f32.mrf.mxu0 }
 0x638   :  { %v2071_v45 = vpop.f32.mrf.mxu0 }
 0x63a   :  { %v4864_v20 = vpop.f32.mrf.mxu0 }
 0x665   :  { %v6013_v21 = vpop.f32.mrf.mxu1 }
 0x667   :  { %v4869_v54 = vpop.f32.mrf.mxu1 }
 0x669   :  { %v2120_v60 = vpop.f32.mrf.mxu1  ;;  %v6015_v22 = vpop.f32.mrf.mxu0 }
 0x66b   :  { %v4870_v12 = vpop.f32.mrf.mxu1  ;;  %v4875_v17 = vpop.f32.mrf.mxu0 }
 0x66d   :  { %v2169_v36 = vpop.f32.mrf.mxu0 }
 0x66f   :  { %v4876_v26 = vpop.f32.mrf.mxu0 }
 0x671   :  { %v2322_v47 = vpop.f32.mrf.mxu0 }
 0x672   :  { %v2678_v59 = vsel %vm442_vm1, %v2322_v47, -inf }
 0x673   :  { %2679 = vmax.xlane.f32.xlu0 %v2678_v59  ;;  %v4887_v13 = vpop.f32.mrf.mxu0 }
 0x675   :  { %v2325_v10 = vpop.f32.mrf.mxu0 }
 0x677   :  { %v4888_v33 = vpop.f32.mrf.mxu0 }
 0x679   :  { %v2422_v58 = vpop.f32.mrf.mxu0 }
 0x67a   :  { %v2684_v27 = vsel %vm442_vm1, %v2422_v58, -inf }
 0x67b   :  { %2685 = vmax.xlane.f32.xlu0 %v2684_v27  ;;  %v4899_v62 = vpop.f32.mrf.mxu0 }
 0x67d   :  { %v2425_v50 = vpop.f32.mrf.mxu0 }
 0x67f   :  { %v4900_v40 = vpop.f32.mrf.mxu0 }
 0x681   :  { %v6019_v55 = vpop.f32.mrf.mxu0 }
 0x682   :  { %v2690_v26 = vsel %vm442_vm1, %v6019_v55, -inf }
 0x683   :  { %v4911_v34 = vpop.f32.mrf.mxu0 }
 0x685   :  { %v2525_v57 = vpop.f32.mrf.mxu0 }
 0x687   :  { %v4912_v4 = vpop.f32.mrf.mxu0 }
 0x689   :  { %v6021_v5 = vpop.f32.mrf.mxu0 }
 0x68a   :  { %v2696_v10 = vsel %vm442_vm1, %v6021_v5, -inf }
 0x68b   :  { %v4923_v6 = vpop.f32.mrf.mxu0 }
 0x68d   :  { %v2625_v35 = vpop.f32.mrf.mxu0 }
 0x68f   :  { %v4924_v8 = vpop.f32.mrf.mxu0 }
 0x69a   :  { %v6023_v38 = vpop.f32.mrf.mxu1 }
 0x69c   :  { %v4881_v39 = vpop.f32.mrf.mxu1 }
 0x69e   :  { %v2218_v30 = vpop.f32.mrf.mxu1 }
 0x6a0   :  { %v4882_v42 = vpop.f32.mrf.mxu1 }
 0x6a2   :  { %v2372_v18 = vpop.f32.mrf.mxu1 }
 0x6a3   :  { %v2681_v9 = vsel %vm442_vm1, %v2372_v18, -inf }
 0x6a4   :  { %2682 = vmax.xlane.f32.xlu1 %v2681_v9  ;;  %v4893_v45 = vpop.f32.mrf.mxu1 }
 0x6a6   :  { %v2375_v20 = vpop.f32.mrf.mxu1 }
 0x6a8   :  { %v4894_v54 = vpop.f32.mrf.mxu1 }
 0x6aa   :  { %v2472_v60 = vpop.f32.mrf.mxu1 }
 0x6ab   :  { %v2687_v12 = vsel %vm442_vm1, %v2472_v60, -inf }
 0x6ac   :  { %2688 = vmax.xlane.f32.xlu0 %v2687_v12  ;;  %v4905_v17 = vpop.f32.mrf.mxu1 }
 0x6ad   :  { %v2871_v17 = vpop.permute.xlu1 %2870 }
 0x6ae   :  { %v2475_v36 = vpop.f32.mrf.mxu1 }
 0x6b0   :  { %2691 = vmax.xlane.f32.xlu0 %v2690_v26  ;;  %v4906_v59 = vpop.f32.mrf.mxu1 }
 0x6b2   :  { %v2572_v13 = vpop.f32.mrf.mxu1 }
 0x6b3   :  { %v2693_v33 = vsel %vm442_vm1, %v2572_v13, -inf }
 0x6b4   :  { %2697 = vmax.xlane.f32.xlu0 %v2696_v10  ;;  %2694 = vmax.xlane.f32.xlu1 %v2693_v33  ;;  %v4917_v27 = vpop.f32.mrf.mxu1 }
 0x6b6   :  { %v2575_v62 = vpop.f32.mrf.mxu1 }
 0x6b8   :  { %v4918_v50 = vpop.f32.mrf.mxu1 }
 0x6ba   :  { %v6032_v40 = vpop.f32.mrf.mxu1 }
 0x6bb   :  { %v2699_v6 = vsel %vm442_vm1, %v6032_v40, -inf }
 0x6bc   :  { %v4929_v34 = vpop.f32.mrf.mxu1 }
 0x6be   :  { %v2675_v57 = vpop.f32.mrf.mxu1 }
 0x6c0   :  { %v4930_v4 = vpop.f32.mrf.mxu1 }
 0x6c5   :  { %3014 = vrot.lane.b32.xlu1 %v5730_v37, %s5390_s11 }
 0x6ca   :  { %2966 = vrot.lane.b32.xlu0 %v5707_v19, %s5390_s11 }
 0x6e9   :  { %2700 = vmax.xlane.f32.xlu1 %v2699_v6 }
 0x6fc   :  { %v2680_v35 = vpop.xlane.xlu0 %2679 }
 0x6fd   :  { %v2702_v8 = vsub.f32 %v2322_v47, %v2680_v35  ;;  %v6048_v47 = vpop.permute.xlu1 %2918 }
 0x6ff   :  { %v2710_v39 = vmul.f32 1.442695, %v2702_v8 }
 0x701   :  { %5229 = vpow2.f32 %v2710_v39 }
 0x704   :  { %v2686_v30 = vpop.xlane.xlu0 %2685 }
 0x705   :  { %v2704_v42 = vsub.f32 %v2422_v58, %v2686_v30 }
 0x707   :  { %v2714_v9 = vmul.f32 1.442695, %v2704_v42 }
 0x709   :  { %5231 = vpow2.f32 %v2714_v9 }
 0x70e   :  { %v6040_v45 = vpop.eup %5229 }
 0x70f   :  { %v2726_v20 = vsel %vm442_vm1, %v6040_v45, 0.0 }
 0x710   :  { %2727 = vadd.xlane.f32.xlu0 %v2726_v20 }
 0x716   :  { %v6044_v54 = vpop.eup %5231 }
 0x717   :  { %v2732_v12 = vsel %vm442_vm1, %v6044_v54, 0.0 }
 0x718   :  { %2733 = vadd.xlane.f32.xlu0 %v2732_v12 }
 0x72d   :  { %v2683_v36 = vpop.xlane.xlu1 %2682 }
 0x72e   :  { %v2703_v26 = vsub.f32 %v2372_v18, %v2683_v36 }
 0x730   :  { %v2712_v58 = vmul.f32 1.442695, %v2703_v26 }
 0x732   :  { %5233 = vpow2.f32 %v2712_v58 }
 0x735   :  { %v2689_v59 = vpop.xlane.xlu0 %2688 }
 0x736   :  { %v2705_v10 = vsub.f32 %v2472_v60, %v2689_v59 }
 0x738   :  { %v2716_v33 = vmul.f32 1.442695, %v2705_v10 }
 0x739   :  { %v2692_v27 = vpop.xlane.xlu0 %2691 }
 0x73a   :  { %5235 = vpow2.f32 %v2716_v33  ;;  %v2706_v62 = vsub.f32 %v6019_v55, %v2692_v27  ;;  %v2876_v27 = vsel %vm910_vm2, %v2871_v17, 0 }
 0x73c   :  { %v2718_v50 = vmul.f32 1.442695, %v2706_v62 }
 0x73d   :  { %v2695_v55 = vpop.xlane.xlu1 %2694  ;;  %v2698_v8 = vpop.xlane.xlu0 %2697 }
 0x73e   :  { %5237 = vpow2.f32 %v2718_v50  ;;  %v2707_v35 = vsub.f32 %v2572_v13, %v2695_v55  ;;  %v2708_v39 = vsub.f32 %v6021_v5, %v2698_v8 }
 0x73f   :  { %v6051_v34 = vpop.eup %5233 }
 0x740   :  { %v2729_v57 = vsel %vm442_vm1, %v6051_v34, 0.0  ;;  %v2720_v30 = vmul.f32 1.442695, %v2707_v35  ;;  %v2722_v42 = vmul.f32 1.442695, %v2708_v39 }
 0x741   :  { %2730 = vadd.xlane.f32.xlu1 %v2729_v57  ;;  %v3015_v5 = vpop.permute.xlu1 %3014  ;;  %v2967_v13 = vpop.permute.xlu0 %2966 }
 0x742   :  { %5239 = vpow2.f32 %v2720_v30  ;;  %v3020_v50 = vsel %vm910_vm2, %v3015_v5, 0 }
 0x743   :  { %5241 = vpow2.f32 %v2722_v42 }
 0x747   :  { %v6055_v4 = vpop.eup %5235 }
 0x748   :  { %v2735_v18 = vsel %vm442_vm1, %v6055_v4, 0.0 }
 0x749   :  { %2736 = vadd.xlane.f32.xlu1 %v2735_v18 }
 0x74b   :  { %v6059_v60 = vpop.eup %5237 }
 0x74c   :  { %v2738_v6 = vsel %vm442_vm1, %v6059_v60, 0.0 }
 0x74d   :  { %2739 = vadd.xlane.f32.xlu0 %v2738_v6 }
 0x74f   :  { %v6068_v9 = vpop.eup %5239 }
 0x750   :  { %v2741_v20 = vsel %vm442_vm1, %v6068_v9, 0.0  ;;  %v6072_v12 = vpop.eup %5241 }
 0x751   :  { %v2744_v36 = vsel %vm442_vm1, %v6072_v12, 0.0 }
 0x75a   :  { %3110 = vrot.lane.b32.xlu1 %v5748_v56, %s5390_s11 }
 0x763   :  { %3062 = vrot.lane.b32.xlu0 %v5726_v32, %s5390_s11 }
 0x772   :  { %v2701_v26 = vpop.xlane.xlu1 %2700 }
 0x773   :  { %v2709_v58 = vsub.f32 %v6032_v40, %v2701_v26 }
 0x775   :  { %v2724_v10 = vmul.f32 1.442695, %v2709_v58 }
 0x77e   :  { %2742 = vadd.xlane.f32.xlu1 %v2741_v20 }
 0x782   :  { %2745 = vadd.xlane.f32.xlu0 %v2744_v36 }
 0x78f   :  { %3267 = vrot.lane.b32.xlu1 %v5477_v48, %s5391_s12 }
 0x798   :  { %3217 = vrot.lane.b32.xlu0 %v5470_v41, %s5391_s12 }
 0x799   :  { %v2728_v59 = vpop.xlane.xlu0 %2727 }
 0x79a   :  { %5243 = vrcp.f32 %v2728_v59 }
 0x79b   :  { %5245 = vpow2.f32 %v2724_v10 }
 0x79c   :  { %3215 = vrot.lane.b32.xlu0 %v5480_v51, %s5391_s12 }
 0x7a0   :  { %3317 = vrot.lane.b32.xlu0 %v5482_v52, %s5391_s12 }
 0x7a1   :  { %v2734_v33 = vpop.xlane.xlu0 %2733 }
 0x7a2   :  { %5247 = vrcp.f32 %v2734_v33 }
 0x7a4   :  { %3315 = vrot.lane.b32.xlu0 %v5502_v1, %s5391_s12 }
 0x7a7   :  { %v5244_v48 = vpop.eup %5243 }
 0x7a8   :  { %3417 = vrot.lane.b32.xlu0 %v5504_v2, %s5391_s12  ;;  %v2758_v41 = vmul.f32 %v5244_v48, %v6040_v45  ;;  %v6096_v51 = vpop.eup %5245  ;;  %v2972_v45 = vsel %vm910_vm2, %v2967_v13, 0 }
 0x7a9   :  { %v2747_v2 = vsel %vm442_vm1, %v6096_v51, 0.0 }
 0x7aa   :  { %v2766_v40 = vpack.c.bf16 %v2758_v41, %v2758_v41 }
 0x7ac   :  { %3415 = vrot.lane.b32.xlu0 %v5528_v15, %s5391_s12  ;;  %4934 = vmatmul.mubr.msk.bf16.vlgmr.msra.gmra.mxu0 %vm442_vm1, %v2766_v40 }
 0x7ad   :  { %4944 = vmatpush3.bf16.msra.mxu0 %v2876_v27  ;;  %4945 = vmatprep.mubr.msk.bf16.mxu0 %vm5388_vm0, %v5387_v29 }
 0x7ae   :  { %4955 = vmatprep.subr.bf16.mxu0 %v5387_v29 }
 0x7af   :  { %v5248_v52 = vpop.eup %5247 }
 0x7b0   :  { %3517 = vrot.lane.b32.xlu0 %v5530_v16, %s5391_s12  ;;  %v2760_v1 = vmul.f32 %v5248_v52, %v6044_v54 }
 0x7b2   :  { %v2768_v15 = vpack.c.bf16 %v2760_v1, %v2760_v1 }
 0x7b3   :  { %2748 = vadd.xlane.f32.xlu1 %v2747_v2 }
 0x7b4   :  { %3515 = vrot.lane.b32.xlu0 %v5551_v24, %s5391_s12  ;;  %4946 = vmatmul.mubr.msk.bf16.vlgmr.msra.gmra.mxu0 %vm442_vm1, %v2768_v15 }
 0x7b5   :  { %4956 = vmatpush3.bf16.msra.mxu0 %v2972_v45  ;;  %4957 = vmatprep.mubr.msk.bf16.mxu0 %vm5388_vm0, %v5387_v29 }
 0x7b6   :  { %4967 = vmatprep.subr.bf16.mxu0 %v5387_v29 }
 0x7c4   :  { %3265 = vrot.lane.b32.xlu1 %v5500_v0, %s5391_s12 }
 0x7c8   :  { %3367 = vrot.lane.b32.xlu1 %v5497_v61, %s5391_s12 }
 0x7ca   :  { %v2731_v16 = vpop.xlane.xlu1 %2730 }
 0x7cb   :  { %5249 = vrcp.f32 %v2731_v16 }
 0x7cc   :  { %3365 = vrot.lane.b32.xlu1 %v5526_v14, %s5391_s12 }
 0x7d0   :  { %3467 = vrot.lane.b32.xlu1 %v5523_v11, %s5391_s12  ;;  %v2924_v11 = vsel %vm910_vm2, %v6048_v47, 0 }
 0x7d2   :  { %v2737_v24 = vpop.xlane.xlu1 %2736 }
 0x7d3   :  { %5251 = vrcp.f32 %v2737_v24 }
 0x7d4   :  { %3465 = vrot.lane.b32.xlu1 %v5553_v25, %s5391_s12 }
 0x7d6   :  { %v2740_v54 = vpop.xlane.xlu0 %2739 }
 0x7d7   :  { %5253 = vrcp.f32 %v2740_v54 }
 0x7d8   :  { %v5250_v17 = vpop.eup %5249  ;;  %3567 = vrot.lane.b32.xlu1 %v5543_v23, %s5391_s12 }
 0x7d9   :  { %v2759_v61 = vmul.f32 %v5250_v17, %v6051_v34 }
 0x7da   :  { %v3063_v47 = vpop.permute.xlu0 %3062 }
 0x7db   :  { %v2767_v0 = vpack.c.bf16 %v2759_v61, %v2759_v61  ;;  %v3068_v57 = vsel %vm910_vm2, %v3063_v47, 0 }
 0x7dc   :  { %3565 = vrot.lane.b32.xlu1 %v5567_v28, %s5391_s12 }
 0x7dd   :  { %4940 = vmatmul.mubr.msk.bf16.vlgmr.msra.gmra.mxu1 %vm442_vm1, %v2767_v0 }
 0x7de   :  { %4950 = vmatpush3.bf16.msra.mxu1 %v2924_v11  ;;  %4951 = vmatprep.mubr.msk.bf16.mxu1 %vm5388_vm0, %v5387_v29 }
 0x7df   :  { %4961 = vmatprep.subr.bf16.mxu1 %v5387_v29 }
 0x7e0   :  { %v5252_v14 = vpop.eup %5251 }
 0x7e1   :  { %v2761_v23 = vmul.f32 %v5252_v14, %v6055_v4  ;;  %v3111_v4 = vpop.permute.xlu1 %3110 }
 0x7e2   :  { %v3116_v42 = vsel %vm910_vm2, %v3111_v4, 0 }
 0x7e3   :  { %v2769_v25 = vpack.c.bf16 %v2761_v23, %v2761_v23 }
 0x7e4   :  { %v5254_v62 = vpop.eup %5253 }
 0x7e5   :  { %4952 = vmatmul.mubr.msk.bf16.vlgmr.msra.gmra.mxu1 %vm442_vm1, %v2769_v25  ;;  %v2762_v28 = vmul.f32 %v5254_v62, %v6059_v60 }
 0x7e6   :  { %4962 = vmatpush3.bf16.msra.mxu1 %v3020_v50  ;;  %4963 = vmatprep.mubr.msk.bf16.mxu1 %vm5388_vm0, %v5387_v29 }
 0x7e7   :  { %v2770_v34 = vpack.c.bf16 %v2762_v28, %v2762_v28  ;;  %4973 = vmatprep.subr.bf16.mxu1 %v5387_v29 }
 0x7e9   :  { %4958 = vmatmul.mubr.msk.bf16.vlgmr.msra.gmra.mxu0 %vm442_vm1, %v2770_v34 }
 0x7ea   :  { %4968 = vmatpush3.bf16.msra.mxu0 %v3068_v57  ;;  %4969 = vmatprep.mubr.msk.bf16.mxu0 %vm5388_vm0, %v5387_v29 }
 0x7eb   :  { %4979 = vmatprep.subr.bf16.mxu0 %v5387_v29 }
 0x807   :  { %v2743_v18 = vpop.xlane.xlu1 %2742 }
 0x808   :  { %5255 = vrcp.f32 %v2743_v18 }
 0x80b   :  { %v2746_v60 = vpop.xlane.xlu0 %2745  ;;  %v3268_v48 = vpop.permute.xlu1 %3267 }
 0x80c   :  { %5257 = vrcp.f32 %v2746_v60  ;;  %v3273_v45 = vsel %vm442_vm1, %v3268_v48, 0 }
 0x80f   :  { %v3218_v6 = vpop.permute.xlu0 %3217 }
 0x810   :  { %v3223_v13 = vsel %vm442_vm1, %v3218_v6, 0 }
 0x813   :  { %v3216_v35 = vpop.permute.xlu0 %3215 }
 0x815   :  { %v5256_v55 = vpop.eup %5255 }
 0x816   :  { %v2763_v8 = vmul.f32 %v5256_v55, %v6068_v9 }
 0x817   :  { %v3318_v36 = vpop.permute.xlu0 %3317 }
 0x818   :  { %v2771_v39 = vpack.c.bf16 %v2763_v8, %v2763_v8 }
 0x819   :  { %v5258_v30 = vpop.eup %5257 }
 0x81a   :  { %4964 = vmatmul.mubr.msk.bf16.vlgmr.msra.gmra.mxu1 %vm442_vm1, %v2771_v39  ;;  %v2764_v20 = vmul.f32 %v5258_v30, %v6072_v12  ;;  %v3323_v12 = vsel %vm442_vm1, %v3318_v36, 0 }
 0x81b   :  { %4974 = vmatpush3.bf16.msra.mxu1 %v3116_v42  ;;  %4975 = vmatprep.mubr.msk.bf16.mxu1 %vm5388_vm0, %v5387_v29  ;;  %v3316_v9 = vpop.permute.xlu0 %3315 }
 0x81c   :  { %v2772_v5 = vpack.c.bf16 %v2764_v20, %v2764_v20  ;;  %4985 = vmatprep.subr.bf16.mxu1 %v5387_v29 }
 0x81e   :  { %4970 = vmatmul.mubr.msk.bf16.vlgmr.msra.gmra.mxu0 %vm442_vm1, %v2772_v5 }
 0x81f   :  { %4980 = vmatpush3.bf16.xpose.msra.mxu0 %v3223_v13  ;;  %4981 = vmatprep.mubr.msk.bf16.mxu0 %vm5388_vm0, %v5387_v29  ;;  %v3418_v26 = vpop.permute.xlu0 %3417 }
 0x820   :  { %4991 = vmatprep.subr.bf16.mxu0 %v5387_v29  ;;  %v3423_v59 = vsel %vm442_vm1, %v3418_v26, 0 }
 0x823   :  { %v3416_v58 = vpop.permute.xlu0 %3415 }
 0x826   :  { %4982 = vmatmul.mubr.msk.bf16.vlgmr.msra.gmra.mxu0 %vm442_vm1, %v3216_v35 }
 0x827   :  { %4992 = vmatpush3.bf16.xpose.msra.mxu0 %v3323_v12  ;;  %4993 = vmatprep.mubr.msk.bf16.mxu0 %vm5388_vm0, %v5387_v29  ;;  %v3518_v10 = vpop.permute.xlu0 %3517 }
 0x828   :  { %5003 = vmatprep.subr.bf16.mxu0 %v5387_v29  ;;  %v3523_v33 = vsel %vm442_vm1, %v3518_v10, 0 }
 0x82b   :  { %v3516_v40 = vpop.permute.xlu0 %3515 }
 0x82e   :  { %4994 = vmatmul.mubr.msk.bf16.vlgmr.msra.gmra.mxu0 %vm442_vm1, %v3316_v9 }
 0x82f   :  { %5004 = vmatpush3.bf16.xpose.msra.mxu0 %v3423_v59  ;;  %5005 = vmatprep.mubr.msk.bf16.mxu0 %vm5388_vm0, %v5387_v29 }
 0x830   :  { %5015 = vmatprep.subr.bf16.mxu0 %v5387_v29 }
 0x836   :  { %5006 = vmatmul.mubr.msk.bf16.vlgmr.msra.gmra.mxu0 %vm442_vm1, %v3416_v58 }
 0x837   :  { %5016 = vmatpush3.bf16.xpose.msra.mxu0 %v3523_v33  ;;  %5017 = vmatprep.mubr.msk.bf16.mxu0 %vm5388_vm0, %v5387_v29 }
 0x838   :  { %5027 = vmatprep.subr.bf16.mxu0 %v5387_v29 }
 0x83c   :  { %v2749_v41 = vpop.xlane.xlu1 %2748 }
 0x83d   :  { %5259 = vrcp.f32 %v2749_v41 }
 0x83e   :  { %5018 = vmatmul.mubr.msk.bf16.vlgmr.msra.gmra.mxu0 %vm442_vm1, %v3516_v40 }
 0x83f   :  { %5029 = vmatprep.mubr.msk.bf16.mxu0 %vm5388_vm0, %v5387_v29 }
 0x840   :  { %v3266_v27 = vpop.permute.xlu1 %3265 }
 0x844   :  { %v3368_v2 = vpop.permute.xlu1 %3367 }
 0x845   :  { %v3373_v24 = vsel %vm442_vm1, %v3368_v2, 0 }
 0x848   :  { %v3366_v16 = vpop.permute.xlu1 %3365 }
 0x84a   :  { %v5260_v52 = vpop.eup %5259 }
 0x84b   :  { %v2765_v1 = vmul.f32 %v5260_v52, %v6096_v51 }
 0x84c   :  { %v3468_v54 = vpop.permute.xlu1 %3467 }
 0x84d   :  { %v2773_v15 = vpack.c.bf16 %v2765_v1, %v2765_v1  ;;  %v3473_v17 = vsel %vm442_vm1, %v3468_v54, 0 }
 0x84f   :  { %4976 = vmatmul.mubr.msk.bf16.vlgmr.msra.gmra.mxu1 %vm442_vm1, %v2773_v15 }
 0x850   :  { %4986 = vmatpush3.bf16.xpose.msra.mxu1 %v3273_v45  ;;  %4987 = vmatprep.mubr.msk.bf16.mxu1 %vm5388_vm0, %v5387_v29  ;;  %v3466_v51 = vpop.permute.xlu1 %3465 }
 0x851   :  { %4997 = vmatprep.subr.bf16.mxu1 %v5387_v29 }
 0x854   :  { %v3568_v61 = vpop.permute.xlu1 %3567 }
 0x855   :  { %v3573_v0 = vsel %vm442_vm1, %v3568_v61, 0 }
 0x857   :  { %4988 = vmatmul.mubr.msk.bf16.vlgmr.msra.gmra.mxu1 %vm442_vm1, %v3266_v27 }
 0x858   :  { %4998 = vmatpush3.bf16.xpose.msra.mxu1 %v3373_v24  ;;  %4999 = vmatprep.mubr.msk.bf16.mxu1 %vm5388_vm0, %v5387_v29  ;;  %v3566_v14 = vpop.permute.xlu1 %3565 }
 0x859   :  { %5009 = vmatprep.subr.bf16.mxu1 %v5387_v29 }
 0x85f   :  { %5000 = vmatmul.mubr.msk.bf16.vlgmr.msra.gmra.mxu1 %vm442_vm1, %v3366_v16 }
 0x860   :  { %5010 = vmatpush3.bf16.xpose.msra.mxu1 %v3473_v17  ;;  %5011 = vmatprep.mubr.msk.bf16.mxu1 %vm5388_vm0, %v5387_v29 }
 0x861   :  { %5021 = vmatprep.subr.bf16.mxu1 %v5387_v29 }
 0x867   :  { %5012 = vmatmul.mubr.msk.bf16.vlgmr.msra.gmra.mxu1 %vm442_vm1, %v3466_v51 }
 0x868   :  { %5022 = vmatpush3.bf16.xpose.msra.mxu1 %v3573_v0  ;;  %5023 = vmatprep.mubr.msk.bf16.mxu1 %vm5388_vm0, %v5387_v29 }
 0x869   :  { %5033 = vmatprep.subr.bf16.mxu1 %v5387_v29 }
 0x86c   :  { %v6195_v11 = vpop.f32.mrf.mxu0 }
 0x86e   :  { %v4935_v23 = vpop.f32.mrf.mxu0 }
 0x86f   :  { %5024 = vmatmul.mubr.msk.bf16.vlgmr.msra.gmra.mxu1 %vm442_vm1, %v3566_v14 }
 0x870   :  { %v2819_v25 = vpop.f32.mrf.mxu0  ;;  %5035 = vmatprep.mubr.msk.bf16.mxu1 %vm5388_vm0, %v5387_v29 }
 0x872   :  { %v4936_v62 = vpop.f32.mrf.mxu0 }
 0x874   :  { %v6200_v50 = vpop.f32.mrf.mxu0 }
 0x876   :  { %v4947_v28 = vpop.f32.mrf.mxu0 }
 0x878   :  { %v2915_v47 = vpop.f32.mrf.mxu0 }
 0x87a   :  { %v4948_v34 = vpop.f32.mrf.mxu0 }
 0x89d   :  { %v6202_v57 = vpop.f32.mrf.mxu1 }
 0x89f   :  { %v4941_v4 = vpop.f32.mrf.mxu1 }
 0x8a1   :  { %v2867_v18 = vpop.f32.mrf.mxu1 }
 0x8a3   :  { %v4942_v60 = vpop.f32.mrf.mxu1 }
 0x8a5   :  { %v6204_v6 = vpop.f32.mrf.mxu1 }
 0x8a7   :  { %v4953_v55 = vpop.f32.mrf.mxu1 }
 0x8a9   :  { %v2963_v35 = vpop.f32.mrf.mxu1  ;;  %v6206_v8 = vpop.f32.mrf.mxu0 }
 0x8ab   :  { %v4954_v39 = vpop.f32.mrf.mxu1  ;;  %v4959_v30 = vpop.f32.mrf.mxu0 }
 0x8ad   :  { %v3011_v42 = vpop.f32.mrf.mxu0 }
 0x8af   :  { %v4960_v20 = vpop.f32.mrf.mxu0 }
 0x8da   :  { %v6208_v36 = vpop.f32.mrf.mxu1 }
 0x8dc   :  { %v4965_v5 = vpop.f32.mrf.mxu1 }
 0x8de   :  { %v3059_v13 = vpop.f32.mrf.mxu1  ;;  %v6210_v9 = vpop.f32.mrf.mxu0 }
 0x8e0   :  { %v4966_v12 = vpop.f32.mrf.mxu1  ;;  %v4971_v26 = vpop.f32.mrf.mxu0 }
 0x8e2   :  { %v3107_v58 = vpop.f32.mrf.mxu0 }
 0x8e4   :  { %v4972_v59 = vpop.f32.mrf.mxu0 }
 0x8e6   :  { %v3259_v10 = vpop.f32.mrf.mxu0 }
 0x8e7   :  { %v3615_v33 = vsel %vm442_vm1, %v3259_v10, -inf }
 0x8e8   :  { %3616 = vmax.xlane.f32.xlu0 %v3615_v33  ;;  %v4983_v48 = vpop.f32.mrf.mxu0 }
 0x8ea   :  { %v3262_v41 = vpop.f32.mrf.mxu0 }
 0x8ec   :  { %v4984_v40 = vpop.f32.mrf.mxu0 }
 0x8ee   :  { %v3359_v27 = vpop.f32.mrf.mxu0 }
 0x8ef   :  { %v3621_v52 = vsel %vm442_vm1, %v3359_v27, -inf }
 0x8f0   :  { %3622 = vmax.xlane.f32.xlu0 %v3621_v52  ;;  %v4995_v1 = vpop.f32.mrf.mxu0 }
 0x8f2   :  { %v3362_v2 = vpop.f32.mrf.mxu0 }
 0x8f4   :  { %v4996_v15 = vpop.f32.mrf.mxu0 }
 0x8f6   :  { %v6214_v45 = vpop.f32.mrf.mxu0 }
 0x8f7   :  { %v3627_v30 = vsel %vm442_vm1, %v6214_v45, -inf }
 0x8f8   :  { %v5007_v16 = vpop.f32.mrf.mxu0 }
 0x8fa   :  { %v3462_v24 = vpop.f32.mrf.mxu0 }
 0x8fc   :  { %v5008_v54 = vpop.f32.mrf.mxu0 }
 0x8fe   :  { %v6216_v51 = vpop.f32.mrf.mxu0 }
 0x8ff   :  { %v3633_v5 = vsel %vm442_vm1, %v6216_v51, -inf }
 0x900   :  { %v5019_v17 = vpop.f32.mrf.mxu0 }
 0x902   :  { %v3562_v61 = vpop.f32.mrf.mxu0 }
 0x904   :  { %v5020_v0 = vpop.f32.mrf.mxu0 }
 0x90f   :  { %v6218_v14 = vpop.f32.mrf.mxu1 }
 0x911   :  { %v4977_v23 = vpop.f32.mrf.mxu1 }
 0x913   :  { %v3155_v25 = vpop.f32.mrf.mxu1 }
 0x915   :  { %v4978_v62 = vpop.f32.mrf.mxu1 }
 0x917   :  { %v3309_v28 = vpop.f32.mrf.mxu1 }
 0x918   :  { %v3618_v47 = vsel %vm442_vm1, %v3309_v28, -inf }
 0x919   :  { %3619 = vmax.xlane.f32.xlu1 %v3618_v47  ;;  %v4989_v34 = vpop.f32.mrf.mxu1 }
 0x91b   :  { %v3312_v4 = vpop.f32.mrf.mxu1 }
 0x91d   :  { %v4990_v18 = vpop.f32.mrf.mxu1 }
 0x91f   :  { %v6221_v60 = vpop.f32.mrf.mxu1 }
 0x920   :  { %v3624_v55 = vsel %vm442_vm1, %v6221_v60, -inf }
 0x921   :  { %3625 = vmax.xlane.f32.xlu0 %v3624_v55  ;;  %v5001_v35 = vpop.f32.mrf.mxu1 }
 0x923   :  { %v3412_v39 = vpop.f32.mrf.mxu1 }
 0x925   :  { %3628 = vmax.xlane.f32.xlu0 %v3627_v30  ;;  %v5002_v42 = vpop.f32.mrf.mxu1 }
 0x927   :  { %v6227_v20 = vpop.f32.mrf.mxu1 }
 0x928   :  { %v3630_v13 = vsel %vm442_vm1, %v6227_v20, -inf }
 0x929   :  { %3634 = vmax.xlane.f32.xlu0 %v3633_v5  ;;  %3631 = vmax.xlane.f32.xlu1 %v3630_v13  ;;  %v5013_v12 = vpop.f32.mrf.mxu1 }
 0x92b   :  { %v3512_v26 = vpop.f32.mrf.mxu1 }
 0x92c   :  { %v4491_v26 = vpack.c.bf16 %v5993_v46, %v5993_v46 }
 0x92d   :  { %v5014_v58 = vpop.f32.mrf.mxu1 }
 0x92f   :  { %v6233_v59 = vpop.f32.mrf.mxu1 }
 0x930   :  { %v3636_v40 = vsel %vm442_vm1, %v6233_v59, -inf }
 0x931   :  { %v5025_v33 = vpop.f32.mrf.mxu1 }
 0x933   :  { %v3612_v48 = vpop.f32.mrf.mxu1 }
 0x935   :  { %v5026_v41 = vpop.f32.mrf.mxu1 }
 0x93a   :  { %3759 = vrot.lane.b32.xlu1 %v5587_v31, %s5391_s12 }
 0x93e   :  { %3807 = vrot.lane.b32.xlu1 %v5688_v63, %s5391_s12 }
 0x93f   :  { %3711 = vrot.lane.b32.xlu0 %v5585_v44, %s5391_s12 }
 0x962   :  { %3637 = vmax.xlane.f32.xlu1 %v3636_v40 }
 0x971   :  { %v3617_v52 = vpop.xlane.xlu0 %3616 }
 0x972   :  { %v3639_v1 = vsub.f32 %v3259_v10, %v3617_v52 }
 0x973   :  { %3855 = vrot.lane.b32.xlu1 %v5694_v3, %s5391_s12 }
 0x974   :  { %v3647_v2 = vmul.f32 1.442695, %v3639_v1 }
 0x976   :  { %5261 = vpow2.f32 %v3647_v2 }
 0x979   :  { %v3623_v15 = vpop.xlane.xlu0 %3622 }
 0x97a   :  { %v3641_v16 = vsub.f32 %v3359_v27, %v3623_v15  ;;  %v4500_v15 = vpack.c.bf16 %v6202_v57, %v6202_v57 }
 0x97c   :  { %v3651_v31 = vmul.f32 1.442695, %v3641_v16 }
 0x97e   :  { %5263 = vpow2.f32 %v3651_v31 }
 0x983   :  { %v6245_v24 = vpop.eup %5261 }
 0x984   :  { %v3663_v44 = vsel %vm442_vm1, %v6245_v24, 0.0 }
 0x985   :  { %3664 = vadd.xlane.f32.xlu0 %v3663_v44  ;;  %v4496_v44 = vpack.c.bf16 %v6013_v21, %v6013_v21 }
 0x98b   :  { %v6249_v63 = vpop.eup %5263 }
 0x98c   :  { %v3669_v10 = vsel %vm442_vm1, %v6249_v63, 0.0 }
 0x98d   :  { %3670 = vadd.xlane.f32.xlu0 %v3669_v10 }
 0x9a2   :  { %v3620_v54 = vpop.xlane.xlu1 %3619 }
 0x9a3   :  { %v3640_v3 = vsub.f32 %v3309_v28, %v3620_v54  ;;  %3903 = vrot.lane.b32.xlu0 %v5707_v19, %s5391_s12 }
 0x9a5   :  { %v3649_v27 = vmul.f32 1.442695, %v3640_v3  ;;  %v4504_v3 = vpack.c.bf16 %v6208_v36, %v6208_v36 }
 0x9a7   :  { %5265 = vpow2.f32 %v3649_v27 }
 0x9aa   :  { %v3626_v17 = vpop.xlane.xlu0 %3625 }
 0x9ab   :  { %v3642_v42 = vsub.f32 %v6221_v60, %v3626_v17  ;;  %v4499_v60 = vpack.c.bf16 %v6195_v11, %v6195_v11  ;;  %v4495_v11 = vpack.c.bf16 %v6011_v49, %v6011_v49  ;;  %v4505_v49 = vpack.c.bf16 %v6210_v9, %v6210_v9 }
 0x9ad   :  { %v3653_v5 = vmul.f32 1.442695, %v3642_v42 }
 0x9ae   :  { %v3629_v61 = vpop.xlane.xlu0 %3628 }
 0x9af   :  { %v3643_v0 = vsub.f32 %v6214_v45, %v3629_v61 }
 0x9b1   :  { %v3655_v23 = vmul.f32 1.442695, %v3643_v0 }
 0x9b2   :  { %v3635_v25 = vpop.xlane.xlu0 %3634  ;;  %v3632_v62 = vpop.xlane.xlu1 %3631 }
 0x9b3   :  { %5267 = vpow2.f32 %v3655_v23  ;;  %v3645_v47 = vsub.f32 %v6216_v51, %v3635_v25  ;;  %v3644_v13 = vsub.f32 %v6227_v20, %v3632_v62 }
 0x9b4   :  { %v6257_v34 = vpop.eup %5265 }
 0x9b5   :  { %v3659_v4 = vmul.f32 1.442695, %v3645_v47  ;;  %v3666_v28 = vsel %vm442_vm1, %v6257_v34, 0.0  ;;  %v3657_v12 = vmul.f32 1.442695, %v3644_v13 }
 0x9b6   :  { %v3712_v18 = vpop.permute.xlu0 %3711  ;;  %v3760_v19 = vpop.permute.xlu1 %3759  ;;  %3667 = vadd.xlane.f32.xlu1 %v3666_v28 }
 0x9b7   :  { %5269 = vpow2.f32 %v3659_v4  ;;  %v3717_v55 = vsel %vm910_vm2, %v3712_v18, 0  ;;  %v3765_v45 = vsel %vm910_vm2, %v3760_v19, 0 }
 0x9b8   :  { %5028 = vmatpush3.bf16.msra.mxu0 %v3717_v55  ;;  %5034 = vmatpush3.bf16.msra.mxu1 %v3765_v45  ;;  %5271 = vpow2.f32 %v3653_v5 }
 0x9b9   :  { %5039 = vmatprep.subr.bf16.mxu0 %v5387_v29  ;;  %5045 = vmatprep.subr.bf16.mxu1 %v5387_v29  ;;  %5273 = vpow2.f32 %v3657_v12 }
 0x9ba   :  { %v3808_v58 = vpop.permute.xlu1 %3807 }
 0x9c0   :  { %v6265_v51 = vpop.eup %5267 }
 0x9c1   :  { %v3675_v35 = vsel %vm442_vm1, %v6265_v51, 0.0 }
 0x9c2   :  { %3676 = vadd.xlane.f32.xlu0 %v3675_v35 }
 0x9c4   :  { %v6269_v39 = vpop.eup %5269 }
 0x9c5   :  { %v3681_v30 = vsel %vm442_vm1, %v6269_v39, 0.0  ;;  %v6287_v20 = vpop.eup %5271 }
 0x9c6   :  { %3682 = vadd.xlane.f32.xlu0 %v3681_v30  ;;  %v3672_v46 = vsel %vm442_vm1, %v6287_v20, 0.0  ;;  %v6294_v33 = vpop.eup %5273 }
 0x9c7   :  { %3951 = vrot.lane.b32.xlu1 %v5730_v37, %s5391_s12  ;;  %v4493_v37 = vpack.c.bf16 %v6000_v7, %v6000_v7  ;;  %v3678_v40 = vsel %vm442_vm1, %v6294_v33, 0.0 }
 0x9dc   :  { %3999 = vrot.lane.b32.xlu0 %v5726_v32, %s5391_s12  ;;  %v4501_v32 = vpack.c.bf16 %v6200_v50, %v6200_v50  ;;  %v4497_v50 = vpack.c.bf16 %v6015_v22, %v6015_v22  ;;  %v4492_v22 = vpack.c.bf16 %v6007_v43, %v6007_v43  ;;  %v4502_v43 = vpack.c.bf16 %v6204_v6, %v6204_v6 }
 0x9e0   :  { %2245 = vrot.lane.b32.xlu0 %v4491_v26, %s5392_s13 }
 0x9e4   :  { %2249 = vrot.lane.b32.xlu0 %v4493_v37, %s5392_s13 }
 0x9e8   :  { %3182 = vrot.lane.b32.xlu0 %v4499_v60, %s5393_s14 }
 0x9eb   :  { %3673 = vadd.xlane.f32.xlu1 %v3672_v46  ;;  %v3638_v7 = vpop.xlane.xlu1 %3637 }
 0x9ec   :  { %v3646_v48 = vsub.f32 %v6233_v59, %v3638_v7  ;;  %3186 = vrot.lane.b32.xlu0 %v4501_v32, %s5393_s14  ;;  %v4503_v59 = vpack.c.bf16 %v6206_v8, %v6206_v8  ;;  %v4494_v8 = vpack.c.bf16 %v6009_v53, %v6009_v53  ;;  %v3813_v53 = vsel %vm910_vm2, %v3808_v58, 0 }
 0x9ee   :  { %v3661_v41 = vmul.f32 1.442695, %v3646_v48 }
 0x9ef   :  { %3679 = vadd.xlane.f32.xlu1 %v3678_v40 }
 0x9f0   :  { %5275 = vpow2.f32 %v3661_v41  ;;  %2253 = vrot.lane.b32.xlu0 %v4495_v11, %s5392_s13 }
 0x9f4   :  { %2257 = vrot.lane.b32.xlu0 %v4497_v50, %s5392_s13 }
 0x9f8   :  { %3190 = vrot.lane.b32.xlu0 %v4503_v59, %s5393_s14 }
 0x9fc   :  { %3194 = vrot.lane.b32.xlu0 %v4505_v49, %s5393_s14 }
 0x9fd   :  { %v6312_v52 = vpop.eup %5275 }
 0x9fe   :  { %v3684_v1 = vsel %vm442_vm1, %v6312_v52, 0.0 }
 0x9ff   :  { %3685 = vadd.xlane.f32.xlu1 %v3684_v1 }
 0xa0e   :  { %v3665_v2 = vpop.xlane.xlu0 %3664 }
 0xa0f   :  { %5277 = vrcp.f32 %v3665_v2 }
 0xa10   :  { %4047 = vrot.lane.b32.xlu1 %v5748_v56, %s5391_s12 }
 0xa14   :  { %2247 = vrot.lane.b32.xlu1 %v4492_v22, %s5392_s13 }
 0xa16   :  { %v3671_v9 = vpop.xlane.xlu0 %3670 }
 0xa17   :  { %5279 = vrcp.f32 %v3671_v9 }
 0xa18   :  { %2251 = vrot.lane.b32.xlu1 %v4494_v8, %s5392_s13 }
 0xa1a   :  { %v3904_v10 = vpop.permute.xlu0 %3903 }
 0xa1b   :  { %v3909_v21 = vsel %vm910_vm2, %v3904_v10, 0 }
 0xa1c   :  { %v5278_v16 = vpop.eup %5277  ;;  %3184 = vrot.lane.b32.xlu1 %v4500_v15, %s5393_s14 }
 0xa1d   :  { %v3695_v56 = vmul.f32 %v5278_v16, %v6245_v24  ;;  %v4498_v24 = vpack.c.bf16 %v6023_v38, %v6023_v38  ;;  %v4506_v38 = vpack.c.bf16 %v6218_v14, %v6218_v14 }
 0xa1f   :  { %v3703_v31 = vpack.c.bf16 %v3695_v56, %v3695_v56 }
 0xa20   :  { %3188 = vrot.lane.b32.xlu1 %v4502_v43, %s5393_s14 }
 0xa21   :  { %5030 = vmatmul.mubr.msk.bf16.vlgmr.msra.gmra.mxu0 %vm442_vm1, %v3703_v31 }
 0xa22   :  { %5040 = vmatpush3.bf16.msra.mxu0 %v3813_v53  ;;  %5041 = vmatprep.mubr.msk.bf16.mxu0 %vm5388_vm0, %v5387_v29 }
 0xa23   :  { %5051 = vmatprep.subr.bf16.mxu0 %v5387_v29 }
 0xa24   :  { %v5280_v57 = vpop.eup %5279  ;;  %2255 = vrot.lane.b32.xlu1 %v4496_v44, %s5392_s13 }
 0xa25   :  { %v3697_v6 = vmul.f32 %v5280_v57, %v6249_v63  ;;  %v3856_v63 = vpop.permute.xlu1 %3855 }
 0xa26   :  { %v3861_v25 = vsel %vm910_vm2, %v3856_v63, 0  ;;  %v5155_v63 = vld [vmem:[#allocation8 + $0x30] sm:$0xff]  }
 0xa27   :  { %v3705_v54 = vpack.c.bf16 %v3697_v6, %v3697_v6 }
 0xa28   :  { %2259 = vrot.lane.b32.xlu1 %v4498_v24, %s5392_s13 }
 0xa29   :  { %5042 = vmatmul.mubr.msk.bf16.vlgmr.msra.gmra.mxu0 %vm442_vm1, %v3705_v54 }
 0xa2a   :  { %5052 = vmatpush3.bf16.msra.mxu0 %v3909_v21  ;;  %5053 = vmatprep.mubr.msk.bf16.mxu0 %vm5388_vm0, %v5387_v29 }
 0xa2b   :  { %5063 = vmatprep.subr.bf16.mxu0 %v5387_v29 }
 0xa2c   :  { %3192 = vrot.lane.b32.xlu1 %v4504_v3, %s5393_s14 }
 0xa30   :  { %3196 = vrot.lane.b32.xlu1 %v4506_v38, %s5393_s14  ;;  %v5154_v38 = vld [vmem:[#allocation8 + $0x38] sm:$0xff]  }
 0xa3f   :  { %v3668_v27 = vpop.xlane.xlu1 %3667 }
 0xa40   :  { %5281 = vrcp.f32 %v3668_v27 }
 0xa43   :  { %v3952_v13 = vpop.permute.xlu1 %3951 }
 0xa44   :  { %v3957_v46 = vsel %vm910_vm2, %v3952_v13, 0 }
 0xa4b   :  { %v3677_v17 = vpop.xlane.xlu0 %3676 }
 0xa4c   :  { %5283 = vrcp.f32 %v3677_v17 }
 0xa4d   :  { %v5282_v61 = vpop.eup %5281 }
 0xa4e   :  { %v3696_v36 = vmul.f32 %v5282_v61, %v6257_v34 }
 0xa4f   :  { %v3683_v0 = vpop.xlane.xlu0 %3682 }
 0xa50   :  { %v3704_v23 = vpack.c.bf16 %v3696_v36, %v3696_v36  ;;  %5285 = vrcp.f32 %v3683_v0  ;;  %v5156_v36 = vld [vmem:[#allocation8 + $0x28] sm:$0xff]  }
 0xa52   :  { %5036 = vmatmul.mubr.msk.bf16.vlgmr.msra.gmra.mxu1 %vm442_vm1, %v3704_v23 }
 0xa53   :  { %5046 = vmatpush3.bf16.msra.mxu1 %v3861_v25  ;;  %v4000_v62 = vpop.permute.xlu0 %3999  ;;  %5047 = vmatprep.mubr.msk.bf16.mxu1 %vm5388_vm0, %v5387_v29  ;;  %v5157_v25 = vld [vmem:[#allocation8 + $0x20] sm:$0xff]  }
 0xa54   :  { %5057 = vmatprep.subr.bf16.mxu1 %v5387_v29  ;;  %v4005_v19 = vsel %vm910_vm2, %v4000_v62, 0 }
 0xa57   :  { %v2246_v14 = vpop.permute.xlu0 %2245 }
 0xa58   :  { %2270 = vst.msk [vmem:[#allocation2] sm:$0xf] %vm2269_vm4, %v2246_v14 }
 0xa59   :  { %v5284_v47 = vpop.eup %5283 }
 0xa5a   :  { %v3699_v34 = vmul.f32 %v5284_v47, %v6265_v51 }
 0xa5b   :  { %v2250_v4 = vpop.permute.xlu0 %2249 }
 0xa5c   :  { %v3707_v28 = vpack.c.bf16 %v3699_v34, %v3699_v34  ;;  %2272 = vst.msk [vmem:[#allocation2 + $0x8] sm:$0xf] %vm2269_vm4, %v2250_v4  ;;  %v5158_v34 = vld [vmem:[#allocation8 + $0x18] sm:$0xff]  }
 0xa5d   :  { %v5286_v18 = vpop.eup %5285 }
 0xa5e   :  { %5054 = vmatmul.mubr.msk.bf16.vlgmr.msra.gmra.mxu0 %vm442_vm1, %v3707_v28  ;;  %v3701_v45 = vmul.f32 %v5286_v18, %v6269_v39  ;;  %v5159_v18 = vld [vmem:[#allocation8 + $0x10] sm:$0xff]  }
 0xa5f   :  { %5064 = vmatpush3.bf16.msra.mxu0 %v4005_v19  ;;  %v3183_v55 = vpop.permute.xlu0 %3182  ;;  %5065 = vmatprep.mubr.msk.bf16.mxu0 %vm5388_vm0, %v5387_v29  ;;  %v5160_v19 = vld [vmem:[#allocation8 + $0x8] sm:$0xff]  }
 0xa60   :  { %3207 = vst.msk [vmem:[#allocation2] sm:$0xf] %vm3206_vm5, %v3183_v55  ;;  %v3709_v35 = vpack.c.bf16 %v3701_v45, %v3701_v45  ;;  %5075 = vmatprep.subr.bf16.mxu0 %v5154_v38  ;;  %v5161_v55 = vld [vmem:[#allocation8] sm:$0xff]  }
 0xa63   :  { %v3187_v51 = vpop.permute.xlu0 %3186 }
 0xa64   :  { %3209 = vst.msk [vmem:[#allocation2 + $0x8] sm:$0xf] %vm3206_vm5, %v3187_v51 }
 0xa66   :  { %5066 = vmatmul.mubr.msk.bf16.vlgmr.msra.gmra.mxu0 %vm442_vm1, %v3709_v35 }
 0xa67   :  { %v2254_v30 = vpop.permute.xlu0 %2253  ;;  %5076 = vmatpush3.bf16.msra.mxu0 %v5154_v38 }
 0xa68   :  { %2274 = vst.msk [vmem:[#allocation2 + $0x10] sm:$0xf] %vm2269_vm4, %v2254_v30  ;;  %5077 = vmatprep.subr.bf16.mxu0 %v5155_v63 }
 0xa6b   :  { %v2258_v42 = vpop.permute.xlu0 %2257  ;;  %5078 = vmatpush3.bf16.msra.mxu0 %v5155_v63 }
 0xa6c   :  { %2276 = vst.msk [vmem:[#allocation2 + $0x18] sm:$0xf] %vm2269_vm4, %v2258_v42  ;;  %5079 = vmatprep.subr.bf16.mxu0 %v5156_v36 }
 0xa6f   :  { %v3191_v5 = vpop.permute.xlu0 %3190  ;;  %5080 = vmatpush3.bf16.msra.mxu0 %v5156_v36 }
 0xa70   :  { %3211 = vst.msk [vmem:[#allocation2 + $0x10] sm:$0xf] %vm3206_vm5, %v3191_v5  ;;  %5081 = vmatprep.subr.bf16.mxu0 %v5157_v25 }
 0xa73   :  { %v3195_v12 = vpop.permute.xlu0 %3194  ;;  %5082 = vmatpush3.bf16.msra.mxu0 %v5157_v25 }
 0xa74   :  { %3213 = vst.msk [vmem:[#allocation2 + $0x18] sm:$0xf] %vm3206_vm5, %v3195_v12  ;;  %v3674_v39 = vpop.xlane.xlu1 %3673  ;;  %5083 = vmatprep.subr.bf16.mxu0 %v5158_v34 }
 0xa75   :  { %5287 = vrcp.f32 %v3674_v39 }
 0xa77   :  { %5084 = vmatpush3.bf16.msra.mxu0 %v5158_v34 }
 0xa78   :  { %v3680_v26 = vpop.xlane.xlu1 %3679  ;;  %5085 = vmatprep.subr.bf16.mxu0 %v5159_v18 }
 0xa79   :  { %5289 = vrcp.f32 %v3680_v26 }
 0xa7b   :  { %5086 = vmatpush3.bf16.msra.mxu0 %v5159_v18 }
 0xa7c   :  { %5087 = vmatprep.subr.bf16.mxu0 %v5160_v19 }
 0xa7f   :  { %5088 = vmatpush3.bf16.msra.mxu0 %v5160_v19 }
 0xa80   :  { %5089 = vmatprep.subr.bf16.mxu0 %v5161_v55 }
 0xa82   :  { %v5288_v37 = vpop.eup %5287 }
 0xa83   :  { %v3698_v60 = vmul.f32 %v5288_v37, %v6287_v20  ;;  %5090 = vmatpush3.bf16.msra.mxu0 %v5161_v55 }
 0xa85   :  { %v3706_v58 = vpack.c.bf16 %v3698_v60, %v3698_v60 }
 0xa86   :  { %v5290_v32 = vpop.eup %5289 }
 0xa87   :  { %5048 = vmatmul.mubr.msk.bf16.vlgmr.msra.gmra.mxu1 %vm442_vm1, %v3706_v58  ;;  %v3700_v48 = vmul.f32 %v5290_v32, %v6294_v33 }
 0xa88   :  { %5058 = vmatpush3.bf16.msra.mxu1 %v3957_v46  ;;  %v3686_v7 = vpop.xlane.xlu1 %3685  ;;  %5059 = vmatprep.mubr.msk.bf16.mxu1 %vm5388_vm0, %v5387_v29 }
 0xa89   :  { %5291 = vrcp.f32 %v3686_v7  ;;  %5069 = vmatprep.subr.bf16.mxu1 %v5387_v29  ;;  %v3708_v41 = vpack.c.bf16 %v3700_v48, %v3700_v48 }
 0xa8c   :  { %v4048_v11 = vpop.permute.xlu1 %4047 }
 0xa8d   :  { %v4053_v20 = vsel %vm910_vm2, %v4048_v11, 0 }
 0xa8f   :  { %5060 = vmatmul.mubr.msk.bf16.vlgmr.msra.gmra.mxu1 %vm442_vm1, %v3708_v41 }
 0xa90   :  { %5070 = vmatpush3.bf16.msra.mxu1 %v4053_v20  ;;  %v2248_v40 = vpop.permute.xlu1 %2247  ;;  %5071 = vmatprep.mubr.msk.bf16.mxu1 %vm5388_vm0, %v5387_v29 }
 0xa91   :  { %2271 = vst.msk [vmem:[#allocation2 + $0x4] sm:$0xf] %vm2269_vm4, %v2248_v40 }
 0xa94   :  { %v2252_v50 = vpop.permute.xlu1 %2251 }
 0xa95   :  { %2273 = vst.msk [vmem:[#allocation2 + $0xc] sm:$0xf] %vm2269_vm4, %v2252_v50 }
 0xa96   :  { %v5292_v33 = vpop.eup %5291 }
 0xa97   :  { %v3702_v59 = vmul.f32 %v5292_v33, %v6312_v52 }
 0xa98   :  { %v3185_v49 = vpop.permute.xlu1 %3184 }
 0xa99   :  { %v3710_v1 = vpack.c.bf16 %v3702_v59, %v3702_v59  ;;  %3208 = vst.msk [vmem:[#allocation2 + $0x4] sm:$0xf] %vm3206_vm5, %v3185_v49 }
 0xa9b   :  { %5072 = vmatmul.mubr.msk.bf16.vlgmr.msra.gmra.mxu1 %vm442_vm1, %v3710_v1 }
 0xa9c   :  { %v3189_v2 = vpop.permute.xlu1 %3188 }
 0xa9d   :  { %3210 = vst.msk [vmem:[#allocation2 + $0xc] sm:$0xf] %vm3206_vm5, %v3189_v2 }
 0xaa0   :  { %v2256_v22 = vpop.permute.xlu1 %2255 }
 0xaa1   :  { %2275 = vst.msk [vmem:[#allocation2 + $0x14] sm:$0xf] %vm2269_vm4, %v2256_v22  ;;  %v4470_v22 = vld [vmem:[%s6423_s4] ss:$0 sm:$0xff]  ;;  %s4333_s4 = sshll.u32 %s5395_s18, 4  ;;  %s4334_s4 = int_to_ptr.vmem [resolvable:$true] %s4333_s4 }
 0xaa2   :  { %s5353_s19 = scalar_lea.vmem %s4334_s4, 1024  ;;  %p5358_p2 = scmp.lt.s32.totalorder %s4334_s4, %s4334_s4 }
 0xaa3   :  { %p5354_p1 = scmp.ne.s32.totalorder %s4334_s4, %s5353_s19  ;;  %p5359_p3 = scmp.lt.s32.totalorder %s5353_s19, %s5353_s19 }
 0xaa4   :  { %v2260_v29 = vpop.permute.xlu1 %2259 }
 0xaa5   :  { %2277 = vst.msk [vmem:[#allocation2 + $0x1c] sm:$0xf] %vm2269_vm4, %v2260_v29  ;;  %p5360_p4 = por %p5359_p3, %p5358_p2 }
 0xaa7   :  { %p5361_p5 = pnand %p5360_p4, %p5354_p1 }
 0xaa8   :  { %v3193_v8 = vpop.permute.xlu1 %3192 }
 0xaa9   :  { %3212 = vst.msk [vmem:[#allocation2 + $0x14] sm:$0xf] %vm3206_vm5, %v3193_v8 }
 0xaac   :  { %v3197_v9 = vpop.permute.xlu1 %3196 }
 0xaad   :  { %3214 = vst.msk [vmem:[#allocation2 + $0x1c] sm:$0xf] %vm3206_vm5, %v3197_v9 }
 0xae1   :  { %v3753_v52 = vpop.f32.mrf.mxu0 }
 0xae2   :  { %v4507_v15 = vpack.c.bf16 %v3753_v52, %v3753_v52 }
 0xae3   :  { %v5031_v16 = vpop.f32.mrf.mxu0 }
 0xae4   :  { %4119 = vrot.lane.b32.xlu0 %v4507_v15, %s5394_s15 }
 0xae5   :  { %v3756_v56 = vpop.f32.mrf.mxu0 }
 0xae7   :  { %v5032_v43 = vpop.f32.mrf.mxu0 }
 0xae9   :  { %v3849_v31 = vpop.f32.mrf.mxu0 }
 0xaea   :  { %v4509_v53 = vpack.c.bf16 %v3849_v31, %v3849_v31 }
 0xaeb   :  { %v5043_v44 = vpop.f32.mrf.mxu0 }
 0xaec   :  { %4123 = vrot.lane.b32.xlu0 %v4509_v53, %s5394_s15 }
 0xaed   :  { %v3852_v57 = vpop.f32.mrf.mxu0 }
 0xaef   :  { %v5044_v6 = vpop.f32.mrf.mxu0 }
 0xb12   :  { %v3801_v24 = vpop.f32.mrf.mxu1 }
 0xb13   :  { %v4508_v10 = vpack.c.bf16 %v3801_v24, %v3801_v24 }
 0xb14   :  { %v5037_v54 = vpop.f32.mrf.mxu1 }
 0xb15   :  { %4121 = vrot.lane.b32.xlu1 %v4508_v10, %s5394_s15 }
 0xb16   :  { %v3804_v21 = vpop.f32.mrf.mxu1 }
 0xb18   :  { %v5038_v3 = vpop.f32.mrf.mxu1 }
 0xb1e   :  { %v3945_v27 = vpop.f32.mrf.mxu0 }
 0xb1f   :  { %v4511_v17 = vpack.c.bf16 %v3945_v27, %v3945_v27 }
 0xb20   :  { %v5055_v61 = vpop.f32.mrf.mxu0 }
 0xb21   :  { %4127 = vrot.lane.b32.xlu0 %v4511_v17, %s5394_s15 }
 0xb22   :  { %v3948_v0 = vpop.f32.mrf.mxu0 }
 0xb24   :  { %v5056_v23 = vpop.f32.mrf.mxu0 }
 0xb26   :  { %v4041_v62 = vpop.f32.mrf.mxu0 }
 0xb27   :  { %v4513_v14 = vpack.c.bf16 %v4041_v62, %v4041_v62 }
 0xb28   :  { %v5067_v47 = vpop.f32.mrf.mxu0 }
 0xb29   :  { %4131 = vrot.lane.b32.xlu0 %v4513_v14, %s5394_s15 }
 0xb2a   :  { %v4044_v4 = vpop.f32.mrf.mxu0 }
 0xb2c   :  { %v5068_v28 = vpop.f32.mrf.mxu0 }
 0xb47   :  { %v3897_v45 = vpop.f32.mrf.mxu1 }
 0xb48   :  { %v4510_v51 = vpack.c.bf16 %v3897_v45, %v3897_v45 }
 0xb49   :  { %v5049_v35 = vpop.f32.mrf.mxu1 }
 0xb4a   :  { %4125 = vrot.lane.b32.xlu1 %v4510_v51, %s5394_s15 }
 0xb4b   :  { %v3900_v30 = vpop.f32.mrf.mxu1 }
 0xb4d   :  { %v5050_v42 = vpop.f32.mrf.mxu1 }
 0xb4f   :  { %v3993_v5 = vpop.f32.mrf.mxu1 }
 0xb50   :  { %v4512_v13 = vpack.c.bf16 %v3993_v5, %v3993_v5 }
 0xb51   :  { %v5061_v12 = vpop.f32.mrf.mxu1 }
 0xb52   :  { %4129 = vrot.lane.b32.xlu1 %v4512_v13, %s5394_s15 }
 0xb53   :  { %v3996_v39 = vpop.f32.mrf.mxu1 }
 0xb55   :  { %v5062_v26 = vpop.f32.mrf.mxu1 }
 0xb56   :  { %v4120_v37 = vpop.permute.xlu0 %4119 }
 0xb57   :  { %4144 = vst.msk [vmem:[#allocation2] sm:$0xf] %vm4143_vm6, %v4120_v37 }
 0xb5b   :  { %v4089_v60 = vpop.f32.mrf.mxu1 }
 0xb5c   :  { %v4514_v58 = vpack.c.bf16 %v4089_v60, %v4089_v60 }
 0xb5d   :  { %v5073_v32 = vpop.f32.mrf.mxu1 }
 0xb5e   :  { %v4124_v46 = vpop.permute.xlu0 %4123  ;;  %4133 = vrot.lane.b32.xlu1 %v4514_v58, %s5394_s15 }
 0xb5f   :  { %4146 = vst.msk [vmem:[#allocation2 + $0x8] sm:$0xf] %vm4143_vm6, %v4124_v46  ;;  %v4092_v7 = vpop.f32.mrf.mxu1 }
 0xb61   :  { %v5074_v48 = vpop.f32.mrf.mxu1 }
 0xb87   :  { %v4122_v11 = vpop.permute.xlu1 %4121 }
 0xb88   :  { %4145 = vst.msk [vmem:[#allocation2 + $0x4] sm:$0xf] %vm4143_vm6, %v4122_v11 }
 0xb8f   :  { %v5153_v41 = vld [vmem:[#allocation2] sm:$0xff]  }
 0xb90   :  { %5091 = vmatprep.mubr.bf16.mxu0 %v5153_v41 }
 0xb93   :  { %v4128_v20 = vpop.permute.xlu0 %4127 }
 0xb94   :  { %4148 = vst.msk [vmem:[#allocation2 + $0x10] sm:$0xf] %vm4143_vm6, %v4128_v20 }
 0xb9b   :  { %v4132_v40 = vpop.permute.xlu0 %4131 }
 0xb9c   :  { %4150 = vst.msk [vmem:[#allocation2 + $0x18] sm:$0xf] %vm4143_vm6, %v4132_v40 }
 0xbbc   :  { %v4126_v50 = vpop.permute.xlu1 %4125 }
 0xbbd   :  { %4147 = vst.msk [vmem:[#allocation2 + $0xc] sm:$0xf] %vm4143_vm6, %v4126_v50 }
 0xbc4   :  { %v4130_v33 = vpop.permute.xlu1 %4129  ;;  %v5162_v59 = vld [vmem:[#allocation2 + $0x8] sm:$0xff]  }
 0xbc5   :  { %4149 = vst.msk [vmem:[#allocation2 + $0x14] sm:$0xf] %vm4143_vm6, %v4130_v33  ;;  %5092 = vmatmul.mubr.bf16.vlgmr.msra.gmra.mxu0 %v5162_v59 }
 0xbcc   :  { %v5163_v49 = vld [vmem:[#allocation2 + $0x10] sm:$0xff]  }
 0xbcd   :  { %5095 = vmatprep.mubr.bf16.mxu0 %v5163_v49 }
 0xbd0   :  { %v4134_v1 = vpop.permute.xlu1 %4133 }
 0xbd1   :  { %4151 = vst.msk [vmem:[#allocation2 + $0x1c] sm:$0xf] %vm4143_vm6, %v4134_v1 }
 0xbd8   :  { %v5164_v2 = vld [vmem:[#allocation2 + $0x18] sm:$0xff]  }
 0xbd9   :  { %5096 = vmatmul.mubr.bf16.gmra.mxu0 %v5164_v2 }
 0xc85   :  { %v5093_v29 = vpop.f32.mrf.mxu0 }
 0xc86   :  { %v4298_v8 = vadd.f32 %v5093_v29, %v4470_v22 }
 0xc87   :  { %v4289_v9 = vpop.f32.mrf.mxu0 }
 0xc88   :  { %4322 = vst [vmem:[#allocation9 + $0x10] sm:$0xff] %v4298_v8  ;;  %v4290_v52 = vadd.f32 %v4470_v22, %v4289_v9 }
 0xc89   :  { %v5094_v15 = vpop.f32.mrf.mxu0 }
 0xc8a   :  { %4320 = vst [vmem:[#allocation9] sm:$0xff] %v4290_v52  ;;  %v4301_v16 = vadd.f32 %v5094_v15, %v4470_v22 }
 0xc8b   :  { %v4292_v56 = vpop.f32.mrf.mxu0 }
 0xc8c   :  { %4323 = vst [vmem:[#allocation9 + $0x18] sm:$0xff] %v4301_v16  ;;  %v4293_v43 = vadd.f32 %v4470_v22, %v4292_v56 }
 0xc8e   :  { %4321 = vst [vmem:[#allocation9 + $0x8] sm:$0xff] %v4293_v43 }
 0xc99   :  { %v5097_v31 = vpop.f32.mrf.mxu0 }
 0xc9a   :  { %v4314_v53 = vadd.f32 %v5097_v31, %v4470_v22 }
 0xc9b   :  { %v4305_v44 = vpop.f32.mrf.mxu0 }
 0xc9c   :  { %4326 = vst [vmem:[#allocation9 + $0x30] sm:$0xff] %v4314_v53  ;;  %v4306_v57 = vadd.f32 %v4470_v22, %v4305_v44 }
 0xc9d   :  { %v5098_v6 = vpop.f32.mrf.mxu0 }
 0xc9e   :  { %4324 = vst [vmem:[#allocation9 + $0x20] sm:$0xff] %v4306_v57  ;;  %v4317_v24 = vadd.f32 %v5098_v6, %v4470_v22 }
 0xc9f   :  { %v4308_v10 = vpop.f32.mrf.mxu0 }
 0xca0   :  { %4327 = vst [vmem:[#allocation9 + $0x38] sm:$0xff] %v4317_v24  ;;  %v4309_v54 = vadd.f32 %v4470_v22, %v4308_v10 }
 0xca2   :  { %4325 = vst [vmem:[#allocation9 + $0x28] sm:$0xff] %v4309_v54 }
 0xca3   :  { %5364 = shalt.err (!%p5361_p5)
}
 0xca4   :  { %s5396_s20 = smov 128  }
 0xca5   :  { %4339 = dma.vmem_to_hbm [thread:$0]  %s4334_s4, 1024, %s6424_s5, [#allocation5], %s5396_s20, %s5396_s20, %s5392_s13  }
 0xca6   :  { %5377 = dma.done.wait [#allocation5], 1024  }
 0xca7   :  { %5378 = vsyncadd [#allocation5], 4294966272 }
 0xca8   :  { %4343 = vsyncpa [#allocation4], 1 }
 0xca9   :  { %4344 = vsyncpa [#allocation7], 1 }
 0xcaa   :  { %4345 = vsyncpa [#allocation5], 1 }

</bundles_post_ra>
